<compile_context>
chip_gen: v7x
topology: tpu7x:2x2x1
jax: 0.10.0
libtpu: 0.0.40
codegen_flags: <defaults>
</compile_context>

<pallas_src>
import functools
import math

import jax
import jax.numpy as jnp
from jax.experimental import pallas as pl
from jax.experimental.pallas import tpu as pltpu


# ---------------------------------------------------------------------------
# Kernel
# ---------------------------------------------------------------------------
def mhsa_kernel(x_ref, gamma_ref, beta_ref, w_in_t_ref, b_in_ref,
                w_out_t_ref, b_out_ref, o_ref, ctx_ref, *, num_heads, eps):
    tb, s, e = x_ref.shape
    head_dim = e // num_heads
    rows = tb * s

    # ---- LayerNorm (f32, biased variance, eps matches nn.LayerNorm) ----
    x = x_ref[...].astype(jnp.float32).reshape(rows, e)          # (rows, E)
    mean = jnp.mean(x, axis=-1, keepdims=True)
    cent = x - mean
    var = jnp.mean(cent * cent, axis=-1, keepdims=True)
    xn = cent * jax.lax.rsqrt(var + eps)
    xn = xn * gamma_ref[...] + beta_ref[...]                     # (rows, E) f32

    # ---- In-projection (1/sqrt(hd) already folded into Q rows of W/b) ----
    # Single bf16 QKV slab: cast immediately after the bias add, keep no f32 copy.
    qkv = (jnp.dot(xn.astype(jnp.bfloat16), w_in_t_ref[...],
                   preferred_element_type=jnp.float32)
           + b_in_ref[...]).astype(jnp.bfloat16)                 # (rows, 3E) bf16
    qkv = qkv.reshape(tb, s, 3 * e)
    q_b = qkv[:, :, 0:e]
    k_b = qkv[:, :, e:2 * e]
    v_b = qkv[:, :, 2 * e:3 * e]

    # ---- Per-head attention; ctx written into bf16 scratch at lane offset lo:hi ----
    for h in range(num_heads):
        lo = h * head_dim
        hi = lo + head_dim
        scores = jnp.einsum('bqd,bkd->bqk', q_b[:, :, lo:hi], k_b[:, :, lo:hi],
                            preferred_element_type=jnp.float32)  # (tb, s, s) f32
        scores = scores - jnp.max(scores, axis=-1, keepdims=True)
        p = jnp.exp(scores)
        p = p * pl.reciprocal(jnp.sum(p, axis=-1, keepdims=True), approx=True)
        ctx = jnp.einsum('bqk,bkd->bqd', p.astype(jnp.bfloat16), v_b[:, :, lo:hi],
                         preferred_element_type=jnp.float32)     # (tb, s, hd) f32
        ctx_ref[:, lo:hi] = ctx.reshape(rows, head_dim).astype(jnp.bfloat16)

    # ---- One E-deep out-projection (full MXU contraction) + bias ----
    y = jnp.dot(ctx_ref[...], w_out_t_ref[...],
                preferred_element_type=jnp.float32) + b_out_ref[...]
    o_ref[...] = y.reshape(tb, s, e).astype(o_ref.dtype)


# ---------------------------------------------------------------------------
# VMEM-budget / generation-aware tiling
# ---------------------------------------------------------------------------
def _tile_vmem_bytes(tb, s, e, num_heads):
    """Approximate peak VMEM bytes for one grid step with batch block `tb`."""
    rows = tb * s
    b = 0
    b += 2 * 2 * tb * s * e * 4            # x + out tiles, double-buffered, f32
    b += (3 * e * e + e * e) * 2           # in/out proj weights, bf16, single-buffered
    b += (3 * e + 3 * e) * 4               # biases + LN gamma/beta, f32
    b += rows * e * 4                      # xn (f32)
    b += rows * 3 * e * 4                  # qkv matmul result (f32 transient at peak)
    b += rows * 3 * e * 2                  # qkv (bf16)
    b += tb * s * s * (4 + 2)              # per-head scores f32 + probs bf16
    b += rows * e * 2                      # ctx scratch (bf16)
    b += rows * e * 4                      # y (f32)
    return b


def _tpu_generation_hints():
    """Returns (vmem_budget_bytes, prefer_grid_split)."""
    budget = 96 << 20          # sane default (v5e/v6e: 128 MiB physical)
    prefer_split = False
    try:
        cap = int(pltpu.get_tpu_info().vmem_capacity_bytes)
        budget = cap * 3 // 4                  # headroom for compiler temporaries
        prefer_split = cap <= (64 << 20)       # v7x-like: 64 MiB/TC, 2 TCs share the grid
    except Exception:
        pass
    return budget, prefer_split


def _pick_batch_block(batch, seq, e, num_heads, budget, prefer_split):
    """Largest batch block whose footprint fits `budget`; on 2-TC parts keep >=2 steps."""
    divisors = [d for d in range(1, batch + 1) if batch % d == 0]
    fits = [d for d in divisors if _tile_vmem_bytes(d, seq, e, num_heads) <= budget]
    if not fits:
        fits = [1]
    if prefer_split:
        multi = [d for d in fits if batch // d >= 2]
        if multi:
            return max(multi)
    return max(fits)


def _const_spec(shape):
    """Grid-invariant operand: always block 0, single pipeline buffer."""
    kwargs = {}
    if hasattr(pl, "Buffered"):
        kwargs["pipeline_mode"] = pl.Buffered(1)
    n = len(shape)
    return pl.BlockSpec(shape, lambda b: (0,) * n, **kwargs)


# ---------------------------------------------------------------------------
# Wrapper
# ---------------------------------------------------------------------------
def multi_head_self_attention(x, params, *, num_heads, eps=1e-5):
    """x: (B, S, E) float32. params: LayerNorm + in/out projection weights."""
    B, S, E = x.shape
    assert E % num_heads == 0, "embedding_dim must be divisible by num_heads"
    head_dim = E // num_heads

    gamma = params["ln_weight"].reshape(1, E).astype(jnp.float32)
    beta = params["ln_bias"].reshape(1, E).astype(jnp.float32)

    # Fold 1/sqrt(head_dim) into the Q rows of the in-projection (weight + bias).
    scale = 1.0 / math.sqrt(head_dim)
    scale_vec = jnp.concatenate(
        [jnp.full((E,), scale, jnp.float32), jnp.ones((2 * E,), jnp.float32)])
    w_in = params["in_proj_weight"].astype(jnp.float32) * scale_vec[:, None]   # (3E, E)
    b_in = params["in_proj_bias"].astype(jnp.float32) * scale_vec              # (3E,)

    # Pre-transpose (contraction-last) and cast to bf16: no in-kernel transposes,
    # native-rate MXU, half the resident VMEM for weights.
    w_in_t = w_in.T.astype(jnp.bfloat16)                          # (E, 3E)
    b_in = b_in.reshape(1, 3 * E)
    w_out_t = params["out_proj_weight"].T.astype(jnp.bfloat16)    # (E, E)
    b_out = params["out_proj_bias"].reshape(1, E).astype(jnp.float32)

    budget, prefer_split = _tpu_generation_hints()
    TB = _pick_batch_block(B, S, E, num_heads, budget, prefer_split)
    grid = (B // TB,)
    kernel = functools.partial(mhsa_kernel, num_heads=num_heads, eps=eps)

    return pl.pallas_call(
        kernel,
        out_shape=jax.ShapeDtypeStruct((B, S, E), x.dtype),
        grid_spec=pltpu.PrefetchScalarGridSpec(
            num_scalar_prefetch=0,
            grid=grid,
            in_specs=[
                pl.BlockSpec((TB, S, E), lambda b: (b, 0, 0)),    # x (double-buffered)
                _const_spec((1, E)),                              # ln gamma
                _const_spec((1, E)),                              # ln beta
                _const_spec((E, 3 * E)),                          # in_proj_weight^T (bf16)
                _const_spec((1, 3 * E)),                          # in_proj_bias (scaled)
                _const_spec((E, E)),                              # out_proj_weight^T (bf16)
                _const_spec((1, E)),                              # out_proj_bias
            ],
            out_specs=pl.BlockSpec((TB, S, E), lambda b: (b, 0, 0)),
            scratch_shapes=[pltpu.VMEM((TB * S, E), jnp.bfloat16)],  # ctx (pre out-proj)
        ),
        compiler_params=pltpu.CompilerParams(
            dimension_semantics=("parallel",),
            vmem_limit_bytes=int(budget)),
    )(x, gamma, beta, w_in_t, b_in, w_out_t, b_out)


# ---------------------------------------------------------------------------
# Params / reference / test
# ---------------------------------------------------------------------------
def init_params(key, embedding_dim):
    E = embedding_dim
    ks = jax.random.split(key, 4)
    scale_in = 1.0 / jnp.sqrt(E)
    return {
        "ln_weight": jnp.ones((E,), jnp.float32),
        "ln_bias": jnp.zeros((E,), jnp.float32),
        "in_proj_weight": jax.random.normal(ks[0], (3 * E, E), jnp.float32) * scale_in,
        "in_proj_bias": jax.random.normal(ks[1], (3 * E,), jnp.float32) * 0.02,
        "out_proj_weight": jax.random.normal(ks[2], (E, E), jnp.float32) * scale_in,
        "out_proj_bias": jax.random.normal(ks[3], (E,), jnp.float32) * 0.02,
    }


def _reference(x, params, *, num_heads, eps=1e-5):
    """Pure-JAX f32 reference (matches PyTorch module semantics)."""
    B, S, E = x.shape
    hd = E // num_heads
    mean = x.mean(-1, keepdims=True)
    var = ((x - mean) ** 2).mean(-1, keepdims=True)
    xn = (x - mean) / jnp.sqrt(var + eps) * params["ln_weight"] + params["ln_bias"]
    qkv = xn @ params["in_proj_weight"].T + params["in_proj_bias"]
    q, k, v = jnp.split(qkv, 3, axis=-1)
    q = q.reshape(B, S, num_heads, hd).transpose(0, 2, 1, 3)
    k = k.reshape(B, S, num_heads, hd).transpose(0, 2, 1, 3)
    v = v.reshape(B, S, num_heads, hd).transpose(0, 2, 1, 3)
    s = jnp.einsum('bhqd,bhkd->bhqk', q, k) / jnp.sqrt(hd)
    p = jax.nn.softmax(s, axis=-1)
    ctx = jnp.einsum('bhqk,bhkd->bhqd', p, v).transpose(0, 2, 1, 3).reshape(B, S, E)
    return ctx @ params["out_proj_weight"].T + params["out_proj_bias"]


if __name__ == "__main__":
    B, S, E, H = 2, 16, 32, 4   # batch, seq_len, embedding_dim, num_heads

    key = jax.random.PRNGKey(0)
    kx, kp = jax.random.split(key)
    x = jax.random.normal(kx, (B, S, E), jnp.float32)
    params = init_params(kp, E)

    out = multi_head_self_attention(x, params, num_heads=H)
    jax.block_until_ready(out)
    assert out.shape == (B, S, E), out.shape

    # Loose tolerance: matmul operands are bf16 (f32 accumulation), LN/softmax f32,
    # approx-reciprocal softmax normalization.
    ref = _reference(x, params, num_heads=H)
    err = float(jnp.max(jnp.abs(out - ref)))
    assert err < 1e-1, f"max abs err {err}"

    print("KERNEL_OK")
</pallas_src>

<mosaic_0001>
module attributes {stable_mosaic.version = 11 : i64} {
  func.func @mhsa_kernel(%arg0: i32, %arg1: memref<2x16x32xf32, #tpu.memory_space<vmem>>, %arg2: memref<1x32xf32, #tpu.memory_space<vmem>>, %arg3: memref<1x32xf32, #tpu.memory_space<vmem>>, %arg4: memref<32x96xbf16, #tpu.memory_space<vmem>>, %arg5: memref<1x96xf32, #tpu.memory_space<vmem>>, %arg6: memref<32x32xbf16, #tpu.memory_space<vmem>>, %arg7: memref<1x32xf32, #tpu.memory_space<vmem>>, %arg8: memref<2x16x32xf32, #tpu.memory_space<vmem>>, %arg9: memref<32x32xbf16, #tpu.memory_space<vmem>>) attributes {dimension_semantics = [#tpu.dimension_semantics<parallel>], iteration_bounds = array<i64: 1>, scalar_prefetch = 0 : i64, scratch_operands = 1 : i64, tpu.core_type = #tpu.core_type<tc>, window_params = [{transform_indices = @transform_0, window_bounds = array<i64: 2, 16, 32>}, {pipeline_mode = #tpu.pipeline_mode<synchronous>, transform_indices = @transform_1, window_bounds = array<i64: 1, 32>}, {pipeline_mode = #tpu.pipeline_mode<synchronous>, transform_indices = @transform_2, window_bounds = array<i64: 1, 32>}, {pipeline_mode = #tpu.pipeline_mode<synchronous>, transform_indices = @transform_3, window_bounds = array<i64: 32, 96>}, {pipeline_mode = #tpu.pipeline_mode<synchronous>, transform_indices = @transform_4, window_bounds = array<i64: 1, 96>}, {pipeline_mode = #tpu.pipeline_mode<synchronous>, transform_indices = @transform_5, window_bounds = array<i64: 32, 32>}, {pipeline_mode = #tpu.pipeline_mode<synchronous>, transform_indices = @transform_6, window_bounds = array<i64: 1, 32>}, {transform_indices = @transform_7, window_bounds = array<i64: 2, 16, 32>}]} {
    %c0 = arith.constant 0 : index
    %c0_0 = arith.constant 0 : index
    %c0_1 = arith.constant 0 : index
    %0 = vector.load %arg1[%c0, %c0_0, %c0_1] : memref<2x16x32xf32, #tpu.memory_space<vmem>>, vector<2x16x32xf32>
    %1 = vector.shape_cast %0 : vector<2x16x32xf32> to vector<32x32xf32>
    %cst = arith.constant dense<0.000000e+00> : vector<32xf32>
    %2 = vector.multi_reduction <add>, %1, %cst [1] : vector<32x32xf32> to vector<32xf32>
    %3 = vector.shape_cast %2 : vector<32xf32> to vector<32x1xf32>
    %cst_2 = arith.constant 3.200000e+01 : f32
    %4 = vector.broadcast %cst_2 : f32 to vector<32x1xf32>
    %5 = arith.divf %3, %4 : vector<32x1xf32>
    %6 = vector.broadcast %5 : vector<32x1xf32> to vector<32x32xf32>
    %7 = arith.subf %1, %6 : vector<32x32xf32>
    %8 = arith.mulf %7, %7 : vector<32x32xf32>
    %cst_3 = arith.constant dense<0.000000e+00> : vector<32xf32>
    %9 = vector.multi_reduction <add>, %8, %cst_3 [1] : vector<32x32xf32> to vector<32xf32>
    %10 = vector.shape_cast %9 : vector<32xf32> to vector<32x1xf32>
    %cst_4 = arith.constant 3.200000e+01 : f32
    %11 = vector.broadcast %cst_4 : f32 to vector<32x1xf32>
    %12 = arith.divf %10, %11 : vector<32x1xf32>
    %cst_5 = arith.constant 9.99999974E-6 : f32
    %13 = vector.broadcast %cst_5 : f32 to vector<32x1xf32>
    %14 = arith.addf %12, %13 : vector<32x1xf32>
    %15 = math.rsqrt %14 : vector<32x1xf32>
    %16 = vector.broadcast %15 : vector<32x1xf32> to vector<32x32xf32>
    %17 = arith.mulf %7, %16 : vector<32x32xf32>
    %c0_6 = arith.constant 0 : index
    %c0_7 = arith.constant 0 : index
    %18 = vector.load %arg2[%c0_6, %c0_7] : memref<1x32xf32, #tpu.memory_space<vmem>>, vector<1x32xf32>
    %19 = vector.broadcast %18 : vector<1x32xf32> to vector<32x32xf32>
    %20 = arith.mulf %17, %19 : vector<32x32xf32>
    %c0_8 = arith.constant 0 : index
    %c0_9 = arith.constant 0 : index
    %21 = vector.load %arg3[%c0_8, %c0_9] : memref<1x32xf32, #tpu.memory_space<vmem>>, vector<1x32xf32>
    %22 = vector.broadcast %21 : vector<1x32xf32> to vector<32x32xf32>
    %23 = arith.addf %20, %22 : vector<32x32xf32>
    %24 = arith.truncf %23 : vector<32x32xf32> to vector<32x32xbf16>
    %c0_10 = arith.constant 0 : index
    %c0_11 = arith.constant 0 : index
    %25 = vector.load %arg4[%c0_10, %c0_11] : memref<32x96xbf16, #tpu.memory_space<vmem>>, vector<32x96xbf16>
    %cst_12 = arith.constant dense<0.000000e+00> : vector<32x96xf32>
    %26 = tpu.matmul %24, %25, %cst_12 {dimension_numbers = #tpu.dot_dimension_numbers<[1], [0], [0], [1], [0, 0, 1, 1], [], []>} : vector<32x32xbf16>, vector<32x96xbf16>, vector<32x96xf32> -> vector<32x96xf32>
    %c0_13 = arith.constant 0 : index
    %c0_14 = arith.constant 0 : index
    %27 = vector.load %arg5[%c0_13, %c0_14] : memref<1x96xf32, #tpu.memory_space<vmem>>, vector<1x96xf32>
    %28 = vector.broadcast %27 : vector<1x96xf32> to vector<32x96xf32>
    %29 = arith.addf %26, %28 : vector<32x96xf32>
    %30 = arith.truncf %29 : vector<32x96xf32> to vector<32x96xbf16>
    %31 = vector.shape_cast %30 : vector<32x96xbf16> to vector<2x16x96xbf16>
    %32 = vector.extract_strided_slice %31 {offsets = [0, 0, 0], sizes = [2, 16, 32], strides = [1, 1, 1]} : vector<2x16x96xbf16> to vector<2x16x32xbf16>
    %33 = vector.extract_strided_slice %31 {offsets = [0, 0, 32], sizes = [2, 16, 32], strides = [1, 1, 1]} : vector<2x16x96xbf16> to vector<2x16x32xbf16>
    %34 = vector.extract_strided_slice %31 {offsets = [0, 0, 64], sizes = [2, 16, 32], strides = [1, 1, 1]} : vector<2x16x96xbf16> to vector<2x16x32xbf16>
    %35 = vector.extract_strided_slice %32 {offsets = [0, 0, 0], sizes = [2, 16, 8], strides = [1, 1, 1]} : vector<2x16x32xbf16> to vector<2x16x8xbf16>
    %36 = vector.extract_strided_slice %33 {offsets = [0, 0, 0], sizes = [2, 16, 8], strides = [1, 1, 1]} : vector<2x16x32xbf16> to vector<2x16x8xbf16>
    "tpu.trace_start"() <{level = 10 : i32, message = "bqd,bkd->bqk"}> : () -> ()
    %cst_15 = arith.constant dense<0.000000e+00> : vector<2x16x16xf32>
    %37 = tpu.matmul %35, %36, %cst_15 {dimension_numbers = #tpu.dot_dimension_numbers<[2], [2], [1], [1], [0, 0, 0, 1, 1, 1], [0], [0]>} : vector<2x16x8xbf16>, vector<2x16x8xbf16>, vector<2x16x16xf32> -> vector<2x16x16xf32>
    "tpu.trace_stop"() : () -> ()
    %cst_16 = arith.constant dense<0xFF800000> : vector<2x16xf32>
    %38 = vector.multi_reduction <maximumf>, %37, %cst_16 [2] : vector<2x16x16xf32> to vector<2x16xf32>
    %39 = vector.shape_cast %38 : vector<2x16xf32> to vector<2x16x1xf32>
    %40 = vector.broadcast %39 : vector<2x16x1xf32> to vector<2x16x16xf32>
    %41 = arith.subf %37, %40 : vector<2x16x16xf32>
    %42 = math.exp %41 : vector<2x16x16xf32>
    %cst_17 = arith.constant dense<0.000000e+00> : vector<2x16xf32>
    %43 = vector.multi_reduction <add>, %42, %cst_17 [2] : vector<2x16x16xf32> to vector<2x16xf32>
    %44 = vector.shape_cast %43 : vector<2x16xf32> to vector<2x16x1xf32>
    %45 = tpu.reciprocal %44 {approx = true} : vector<2x16x1xf32> -> vector<2x16x1xf32>
    %46 = vector.broadcast %45 : vector<2x16x1xf32> to vector<2x16x16xf32>
    %47 = arith.mulf %42, %46 : vector<2x16x16xf32>
    %48 = arith.truncf %47 : vector<2x16x16xf32> to vector<2x16x16xbf16>
    %49 = vector.extract_strided_slice %34 {offsets = [0, 0, 0], sizes = [2, 16, 8], strides = [1, 1, 1]} : vector<2x16x32xbf16> to vector<2x16x8xbf16>
    "tpu.trace_start"() <{level = 10 : i32, message = "bqk,bkd->bqd"}> : () -> ()
    %cst_18 = arith.constant dense<0.000000e+00> : vector<2x16x8xf32>
    %50 = tpu.matmul %48, %49, %cst_18 {dimension_numbers = #tpu.dot_dimension_numbers<[2], [1], [1], [2], [0, 0, 0, 1, 1, 2], [0], [0]>} : vector<2x16x16xbf16>, vector<2x16x8xbf16>, vector<2x16x8xf32> -> vector<2x16x8xf32>
    "tpu.trace_stop"() : () -> ()
    %51 = vector.shape_cast %50 : vector<2x16x8xf32> to vector<32x8xf32>
    %52 = arith.truncf %51 : vector<32x8xf32> to vector<32x8xbf16>
    %c0_19 = arith.constant 0 : index
    %c0_20 = arith.constant 0 : index
    %53 = vector.load %arg9[%c0_19, %c0_20] : memref<32x32xbf16, #tpu.memory_space<vmem>>, vector<32x8xbf16>
    tpu.vector_store %arg9[%c0_19, %c0_20], %52 {strides = array<i32>} : memref<32x32xbf16, #tpu.memory_space<vmem>>, vector<32x8xbf16>,
    %54 = vector.extract_strided_slice %32 {offsets = [0, 0, 8], sizes = [2, 16, 8], strides = [1, 1, 1]} : vector<2x16x32xbf16> to vector<2x16x8xbf16>
    %55 = vector.extract_strided_slice %33 {offsets = [0, 0, 8], sizes = [2, 16, 8], strides = [1, 1, 1]} : vector<2x16x32xbf16> to vector<2x16x8xbf16>
    "tpu.trace_start"() <{level = 10 : i32, message = "bqd,bkd->bqk"}> : () -> ()
    %cst_21 = arith.constant dense<0.000000e+00> : vector<2x16x16xf32>
    %56 = tpu.matmul %54, %55, %cst_21 {dimension_numbers = #tpu.dot_dimension_numbers<[2], [2], [1], [1], [0, 0, 0, 1, 1, 1], [0], [0]>} : vector<2x16x8xbf16>, vector<2x16x8xbf16>, vector<2x16x16xf32> -> vector<2x16x16xf32>
    "tpu.trace_stop"() : () -> ()
    %cst_22 = arith.constant dense<0xFF800000> : vector<2x16xf32>
    %57 = vector.multi_reduction <maximumf>, %56, %cst_22 [2] : vector<2x16x16xf32> to vector<2x16xf32>
    %58 = vector.shape_cast %57 : vector<2x16xf32> to vector<2x16x1xf32>
    %59 = vector.broadcast %58 : vector<2x16x1xf32> to vector<2x16x16xf32>
    %60 = arith.subf %56, %59 : vector<2x16x16xf32>
    %61 = math.exp %60 : vector<2x16x16xf32>
    %cst_23 = arith.constant dense<0.000000e+00> : vector<2x16xf32>
    %62 = vector.multi_reduction <add>, %61, %cst_23 [2] : vector<2x16x16xf32> to vector<2x16xf32>
    %63 = vector.shape_cast %62 : vector<2x16xf32> to vector<2x16x1xf32>
    %64 = tpu.reciprocal %63 {approx = true} : vector<2x16x1xf32> -> vector<2x16x1xf32>
    %65 = vector.broadcast %64 : vector<2x16x1xf32> to vector<2x16x16xf32>
    %66 = arith.mulf %61, %65 : vector<2x16x16xf32>
    %67 = arith.truncf %66 : vector<2x16x16xf32> to vector<2x16x16xbf16>
    %68 = vector.extract_strided_slice %34 {offsets = [0, 0, 8], sizes = [2, 16, 8], strides = [1, 1, 1]} : vector<2x16x32xbf16> to vector<2x16x8xbf16>
    "tpu.trace_start"() <{level = 10 : i32, message = "bqk,bkd->bqd"}> : () -> ()
    %cst_24 = arith.constant dense<0.000000e+00> : vector<2x16x8xf32>
    %69 = tpu.matmul %67, %68, %cst_24 {dimension_numbers = #tpu.dot_dimension_numbers<[2], [1], [1], [2], [0, 0, 0, 1, 1, 2], [0], [0]>} : vector<2x16x16xbf16>, vector<2x16x8xbf16>, vector<2x16x8xf32> -> vector<2x16x8xf32>
    "tpu.trace_stop"() : () -> ()
    %70 = vector.shape_cast %69 : vector<2x16x8xf32> to vector<32x8xf32>
    %71 = arith.truncf %70 : vector<32x8xf32> to vector<32x8xbf16>
    %c0_25 = arith.constant 0 : index
    %c8 = arith.constant 8 : index
    %72 = vector.load %arg9[%c0_25, %c8] : memref<32x32xbf16, #tpu.memory_space<vmem>>, vector<32x8xbf16>
    tpu.vector_store %arg9[%c0_25, %c8], %71 {strides = array<i32>} : memref<32x32xbf16, #tpu.memory_space<vmem>>, vector<32x8xbf16>,
    %73 = vector.extract_strided_slice %32 {offsets = [0, 0, 16], sizes = [2, 16, 8], strides = [1, 1, 1]} : vector<2x16x32xbf16> to vector<2x16x8xbf16>
    %74 = vector.extract_strided_slice %33 {offsets = [0, 0, 16], sizes = [2, 16, 8], strides = [1, 1, 1]} : vector<2x16x32xbf16> to vector<2x16x8xbf16>
    "tpu.trace_start"() <{level = 10 : i32, message = "bqd,bkd->bqk"}> : () -> ()
    %cst_26 = arith.constant dense<0.000000e+00> : vector<2x16x16xf32>
    %75 = tpu.matmul %73, %74, %cst_26 {dimension_numbers = #tpu.dot_dimension_numbers<[2], [2], [1], [1], [0, 0, 0, 1, 1, 1], [0], [0]>} : vector<2x16x8xbf16>, vector<2x16x8xbf16>, vector<2x16x16xf32> -> vector<2x16x16xf32>
    "tpu.trace_stop"() : () -> ()
    %cst_27 = arith.constant dense<0xFF800000> : vector<2x16xf32>
    %76 = vector.multi_reduction <maximumf>, %75, %cst_27 [2] : vector<2x16x16xf32> to vector<2x16xf32>
    %77 = vector.shape_cast %76 : vector<2x16xf32> to vector<2x16x1xf32>
    %78 = vector.broadcast %77 : vector<2x16x1xf32> to vector<2x16x16xf32>
    %79 = arith.subf %75, %78 : vector<2x16x16xf32>
    %80 = math.exp %79 : vector<2x16x16xf32>
    %cst_28 = arith.constant dense<0.000000e+00> : vector<2x16xf32>
    %81 = vector.multi_reduction <add>, %80, %cst_28 [2] : vector<2x16x16xf32> to vector<2x16xf32>
    %82 = vector.shape_cast %81 : vector<2x16xf32> to vector<2x16x1xf32>
    %83 = tpu.reciprocal %82 {approx = true} : vector<2x16x1xf32> -> vector<2x16x1xf32>
    %84 = vector.broadcast %83 : vector<2x16x1xf32> to vector<2x16x16xf32>
    %85 = arith.mulf %80, %84 : vector<2x16x16xf32>
    %86 = arith.truncf %85 : vector<2x16x16xf32> to vector<2x16x16xbf16>
    %87 = vector.extract_strided_slice %34 {offsets = [0, 0, 16], sizes = [2, 16, 8], strides = [1, 1, 1]} : vector<2x16x32xbf16> to vector<2x16x8xbf16>
    "tpu.trace_start"() <{level = 10 : i32, message = "bqk,bkd->bqd"}> : () -> ()
    %cst_29 = arith.constant dense<0.000000e+00> : vector<2x16x8xf32>
    %88 = tpu.matmul %86, %87, %cst_29 {dimension_numbers = #tpu.dot_dimension_numbers<[2], [1], [1], [2], [0, 0, 0, 1, 1, 2], [0], [0]>} : vector<2x16x16xbf16>, vector<2x16x8xbf16>, vector<2x16x8xf32> -> vector<2x16x8xf32>
    "tpu.trace_stop"() : () -> ()
    %89 = vector.shape_cast %88 : vector<2x16x8xf32> to vector<32x8xf32>
    %90 = arith.truncf %89 : vector<32x8xf32> to vector<32x8xbf16>
    %c0_30 = arith.constant 0 : index
    %c16 = arith.constant 16 : index
    %91 = vector.load %arg9[%c0_30, %c16] : memref<32x32xbf16, #tpu.memory_space<vmem>>, vector<32x8xbf16>
    tpu.vector_store %arg9[%c0_30, %c16], %90 {strides = array<i32>} : memref<32x32xbf16, #tpu.memory_space<vmem>>, vector<32x8xbf16>,
    %92 = vector.extract_strided_slice %32 {offsets = [0, 0, 24], sizes = [2, 16, 8], strides = [1, 1, 1]} : vector<2x16x32xbf16> to vector<2x16x8xbf16>
    %93 = vector.extract_strided_slice %33 {offsets = [0, 0, 24], sizes = [2, 16, 8], strides = [1, 1, 1]} : vector<2x16x32xbf16> to vector<2x16x8xbf16>
    "tpu.trace_start"() <{level = 10 : i32, message = "bqd,bkd->bqk"}> : () -> ()
    %cst_31 = arith.constant dense<0.000000e+00> : vector<2x16x16xf32>
    %94 = tpu.matmul %92, %93, %cst_31 {dimension_numbers = #tpu.dot_dimension_numbers<[2], [2], [1], [1], [0, 0, 0, 1, 1, 1], [0], [0]>} : vector<2x16x8xbf16>, vector<2x16x8xbf16>, vector<2x16x16xf32> -> vector<2x16x16xf32>
    "tpu.trace_stop"() : () -> ()
    %cst_32 = arith.constant dense<0xFF800000> : vector<2x16xf32>
    %95 = vector.multi_reduction <maximumf>, %94, %cst_32 [2] : vector<2x16x16xf32> to vector<2x16xf32>
    %96 = vector.shape_cast %95 : vector<2x16xf32> to vector<2x16x1xf32>
    %97 = vector.broadcast %96 : vector<2x16x1xf32> to vector<2x16x16xf32>
    %98 = arith.subf %94, %97 : vector<2x16x16xf32>
    %99 = math.exp %98 : vector<2x16x16xf32>
    %cst_33 = arith.constant dense<0.000000e+00> : vector<2x16xf32>
    %100 = vector.multi_reduction <add>, %99, %cst_33 [2] : vector<2x16x16xf32> to vector<2x16xf32>
    %101 = vector.shape_cast %100 : vector<2x16xf32> to vector<2x16x1xf32>
    %102 = tpu.reciprocal %101 {approx = true} : vector<2x16x1xf32> -> vector<2x16x1xf32>
    %103 = vector.broadcast %102 : vector<2x16x1xf32> to vector<2x16x16xf32>
    %104 = arith.mulf %99, %103 : vector<2x16x16xf32>
    %105 = arith.truncf %104 : vector<2x16x16xf32> to vector<2x16x16xbf16>
    %106 = vector.extract_strided_slice %34 {offsets = [0, 0, 24], sizes = [2, 16, 8], strides = [1, 1, 1]} : vector<2x16x32xbf16> to vector<2x16x8xbf16>
    "tpu.trace_start"() <{level = 10 : i32, message = "bqk,bkd->bqd"}> : () -> ()
    %cst_34 = arith.constant dense<0.000000e+00> : vector<2x16x8xf32>
    %107 = tpu.matmul %105, %106, %cst_34 {dimension_numbers = #tpu.dot_dimension_numbers<[2], [1], [1], [2], [0, 0, 0, 1, 1, 2], [0], [0]>} : vector<2x16x16xbf16>, vector<2x16x8xbf16>, vector<2x16x8xf32> -> vector<2x16x8xf32>
    "tpu.trace_stop"() : () -> ()
    %108 = vector.shape_cast %107 : vector<2x16x8xf32> to vector<32x8xf32>
    %109 = arith.truncf %108 : vector<32x8xf32> to vector<32x8xbf16>
    %c0_35 = arith.constant 0 : index
    %c24 = arith.constant 24 : index
    %110 = vector.load %arg9[%c0_35, %c24] : memref<32x32xbf16, #tpu.memory_space<vmem>>, vector<32x8xbf16>
    tpu.vector_store %arg9[%c0_35, %c24], %109 {strides = array<i32>} : memref<32x32xbf16, #tpu.memory_space<vmem>>, vector<32x8xbf16>,
    %c0_36 = arith.constant 0 : index
    %c0_37 = arith.constant 0 : index
    %111 = vector.load %arg9[%c0_36, %c0_37] : memref<32x32xbf16, #tpu.memory_space<vmem>>, vector<32x32xbf16>
    %c0_38 = arith.constant 0 : index
    %c0_39 = arith.constant 0 : index
    %112 = vector.load %arg6[%c0_38, %c0_39] : memref<32x32xbf16, #tpu.memory_space<vmem>>, vector<32x32xbf16>
    %cst_40 = arith.constant dense<0.000000e+00> : vector<32x32xf32>
    %113 = tpu.matmul %111, %112, %cst_40 {dimension_numbers = #tpu.dot_dimension_numbers<[1], [0], [0], [1], [0, 0, 1, 1], [], []>} : vector<32x32xbf16>, vector<32x32xbf16>, vector<32x32xf32> -> vector<32x32xf32>
    %c0_41 = arith.constant 0 : index
    %c0_42 = arith.constant 0 : index
    %114 = vector.load %arg7[%c0_41, %c0_42] : memref<1x32xf32, #tpu.memory_space<vmem>>, vector<1x32xf32>
    %115 = vector.broadcast %114 : vector<1x32xf32> to vector<32x32xf32>
    %116 = arith.addf %113, %115 : vector<32x32xf32>
    %117 = vector.shape_cast %116 : vector<32x32xf32> to vector<2x16x32xf32>
    %c0_43 = arith.constant 0 : index
    %c0_44 = arith.constant 0 : index
    %c0_45 = arith.constant 0 : index
    %118 = vector.load %arg8[%c0_43, %c0_44, %c0_45] : memref<2x16x32xf32, #tpu.memory_space<vmem>>, vector<2x16x32xf32>
    tpu.vector_store %arg8[%c0_43, %c0_44, %c0_45], %117 {strides = array<i32>} : memref<2x16x32xf32, #tpu.memory_space<vmem>>, vector<2x16x32xf32>,
    return
  }
  func.func @transform_0(%arg0: i32) -> (i32, i32, i32) {
    %c0_i32 = arith.constant 0 : i32
    %c0_i32_0 = arith.constant 0 : i32
    %c0_i32_1 = arith.constant 0 : i32
    return %arg0, %c0_i32, %c0_i32_0 : i32, i32, i32
  }
  func.func @transform_1(%arg0: i32) -> (i32, i32) {
    %c0_i32 = arith.constant 0 : i32
    %c0_i32_0 = arith.constant 0 : i32
    %c0_i32_1 = arith.constant 0 : i32
    return %c0_i32, %c0_i32_0 : i32, i32
  }
  func.func @transform_2(%arg0: i32) -> (i32, i32) {
    %c0_i32 = arith.constant 0 : i32
    %c0_i32_0 = arith.constant 0 : i32
    %c0_i32_1 = arith.constant 0 : i32
    return %c0_i32, %c0_i32_0 : i32, i32
  }
  func.func @transform_3(%arg0: i32) -> (i32, i32) {
    %c0_i32 = arith.constant 0 : i32
    %c0_i32_0 = arith.constant 0 : i32
    %c0_i32_1 = arith.constant 0 : i32
    return %c0_i32, %c0_i32_0 : i32, i32
  }
  func.func @transform_4(%arg0: i32) -> (i32, i32) {
    %c0_i32 = arith.constant 0 : i32
    %c0_i32_0 = arith.constant 0 : i32
    %c0_i32_1 = arith.constant 0 : i32
    return %c0_i32, %c0_i32_0 : i32, i32
  }
  func.func @transform_5(%arg0: i32) -> (i32, i32) {
    %c0_i32 = arith.constant 0 : i32
    %c0_i32_0 = arith.constant 0 : i32
    %c0_i32_1 = arith.constant 0 : i32
    return %c0_i32, %c0_i32_0 : i32, i32
  }
  func.func @transform_6(%arg0: i32) -> (i32, i32) {
    %c0_i32 = arith.constant 0 : i32
    %c0_i32_0 = arith.constant 0 : i32
    %c0_i32_1 = arith.constant 0 : i32
    return %c0_i32, %c0_i32_0 : i32, i32
  }
  func.func @transform_7(%arg0: i32) -> (i32, i32, i32) {
    %c0_i32 = arith.constant 0 : i32
    %c0_i32_0 = arith.constant 0 : i32
    %c0_i32_1 = arith.constant 0 : i32
    return %arg0, %c0_i32, %c0_i32_0 : i32, i32, i32
  }
}

</mosaic_0001>

<bundles_post_ra>
// kernel: tpu_custom_call.1
= control target key start
LH: loop header
LB: loop body
LE: loop exit
PB: predicated region body
PF: predicated region fallthrough
CT: control target
= control target key end

     0   :  { %12 = vsyncpa [#allocation4], 0  ;;  %s2232_s0 = inlined_call_operand.hbm [shape: f32[2,16,32], index: 0, kind: input, shape index: {}]   ;;  %s2233_s1 = inlined_call_operand.hbm [shape: f32[1,32], index: 1, kind: input, shape index: {}]   ;;  %s2234_s2 = inlined_call_operand.hbm [shape: f32[1,32], index: 2, kind: input, shape index: {}]   ;;  %s2235_s3 = inlined_call_operand.hbm [shape: bf16[32,96], index: 3, kind: input, shape index: {}]   ;;  %s2236_s4 = inlined_call_operand.hbm [shape: f32[1,96], index: 4, kind: input, shape index: {}]   ;;  %s2237_s5 = inlined_call_operand.hbm [shape: bf16[32,32], index: 5, kind: input, shape index: {}]   ;;  %s2238_s6 = inlined_call_operand.hbm [shape: f32[1,32], index: 6, kind: input, shape index: {}]   ;;  %s2239_s7 = inlined_call_operand.hbm [shape: f32[2,16,32], index: 7, kind: output, shape index: {}]  }
   0x1   :  { %13 = vsyncpa [#allocation7], 0 }
   0x2   :  { %14 = vsyncpa [#allocation10], 0 }
   0x3   :  { %15 = vsyncpa [#allocation13], 0 }
   0x4   :  { %16 = vsyncpa [#allocation5], 0  ;;  %s1860_s24 = smov [#allocation6]   ;;  %s1861_s26 = smov [#allocation9]  }
   0x5   :  { %s35_s25 = sshll.u32 %s1860_s24, 4  ;;  %s54_s27 = sshll.u32 %s1861_s26, 4  ;;  %s36_s25 = int_to_ptr.vmem [resolvable:$true] %s35_s25  ;;  %s1926_s27 = int_to_ptr.vmem [resolvable:$true] %s54_s27 }
   0x6   :  { %s1674_s30 = scalar_lea.hbm %s2233_s1, 16 }
   0x7   :  { %p1675_p0 = scmp.ne.s32.totalorder %s2233_s1, %s1674_s30  ;;  %p1678_p1 = scmp.lt.u32.totalorder %s1674_s30, %s2233_s1 }
   0x9   :  { %p1680_p2 = pnand %p1678_p1, %p1675_p0 }
   0xb   :  { %1683 = shalt.err (!%p1680_p2)
}
   0xc   :  { %s1684_s12 = scalar_lea.vmem %s36_s25, 16  ;;  %s1688_s13 = scalar_lea.vmem %s36_s25, 32 }
   0xd   :  { %p1685_p3 = scmp.ne.s32.totalorder %s36_s25, %s1684_s12  ;;  %p1689_p4 = scmp.lt.s32.totalorder %s36_s25, %s36_s25 }
   0xe   :  { %p1690_p5 = scmp.lt.s32.totalorder %s1688_s13, %s1684_s12 }
  0x10   :  { %p1691_p6 = por %p1690_p5, %p1689_p4 }
  0x12   :  { %p1692_p7 = pnand %p1691_p6, %p1685_p3 }
  0x14   :  { %1695 = shalt.err (!%p1692_p7)
}
  0x15   :  { %38 = dma.hbm_to_vmem [thread:$0]  %s2233_s1, 16, %s36_s25, [#allocation7]  }
  0x16   :  { %s1696_s18 = scalar_lea.hbm %s2235_s3, 256 }
  0x17   :  { %p1697_p8 = scmp.ne.s32.totalorder %s2235_s3, %s1696_s18  ;;  %p1700_p9 = scmp.lt.u32.totalorder %s1696_s18, %s2235_s3 }
  0x19   :  { %p1702_p10 = pnand %p1700_p9, %p1697_p8 }
  0x1b   :  { %1705 = shalt.err (!%p1702_p10)
}
  0x1c   :  { %s1706_s23 = scalar_lea.vmem %s1926_s27, 256  ;;  %p1711_p12 = scmp.lt.s32.totalorder %s1926_s27, %s1926_s27 }
  0x1d   :  { %p1707_p11 = scmp.ne.s32.totalorder %s1926_s27, %s1706_s23  ;;  %p1712_p13 = scmp.lt.s32.totalorder %s1706_s23, %s1706_s23 }
  0x1f   :  { %p1713_p0 = por %p1712_p13, %p1711_p12 }
  0x21   :  { %p1714_p1 = pnand %p1713_p0, %p1707_p11 }
  0x23   :  { %1717 = shalt.err (!%p1714_p1)
}
  0x24   :  { %s1862_s1 = smov 64   ;;  %s1863_s24 = smov 4  }
  0x25   :  { %60 = dma.hbm_to_vmem [thread:$0]  %s2235_s3, 256, %s1926_s27, [#allocation10], %s1862_s1, %s1862_s1, %s1863_s24  }
  0x26   :  { %s1864_s28 = smov [#allocation12]   ;;  %s1865_s30 = smov [#allocation3]  }
  0x27   :  { %s76_s29 = sshll.u32 %s1864_s28, 4  ;;  %s22_s8 = sshll.u32 %s1865_s30, 4  ;;  %s77_s29 = int_to_ptr.vmem [resolvable:$true] %s76_s29  ;;  %s1959_s8 = int_to_ptr.vmem [resolvable:$true] %s22_s8 }
  0x28   :  { %s1718_s11 = scalar_lea.hbm %s2237_s5, 256 }
  0x29   :  { %p1719_p2 = scmp.ne.s32.totalorder %s2237_s5, %s1718_s11  ;;  %p1722_p3 = scmp.lt.u32.totalorder %s1718_s11, %s2237_s5 }
  0x2b   :  { %p1724_p4 = pnand %p1722_p3, %p1719_p2 }
  0x2d   :  { %1727 = shalt.err (!%p1724_p4)
}
  0x2e   :  { %s1728_s3 = scalar_lea.vmem %s77_s29, 256  ;;  %p1733_p6 = scmp.lt.s32.totalorder %s77_s29, %s77_s29 }
  0x2f   :  { %p1729_p5 = scmp.ne.s32.totalorder %s77_s29, %s1728_s3  ;;  %p1734_p7 = scmp.lt.s32.totalorder %s1728_s3, %s1728_s3 }
  0x31   :  { %p1735_p8 = por %p1734_p7, %p1733_p6 }
  0x33   :  { %p1736_p9 = pnand %p1735_p8, %p1729_p5 }
  0x35   :  { %1739 = shalt.err (!%p1736_p9)
}
  0x36   :  { %82 = dma.hbm_to_vmem [thread:$0]  %s2237_s5, 256, %s77_s29, [#allocation13], %s1862_s1, %s1862_s1, %s1863_s24  }
  0x37   :  { %s1740_s19 = scalar_lea.hbm %s2232_s0, 512 }
  0x38   :  { %p1741_p10 = scmp.ne.s32.totalorder %s2232_s0, %s1740_s19  ;;  %p1744_p11 = scmp.lt.u32.totalorder %s1740_s19, %s2232_s0 }
  0x3a   :  { %p1746_p12 = pnand %p1744_p11, %p1741_p10 }
  0x3c   :  { %1749 = shalt.err (!%p1746_p12)
}
  0x3d   :  { %s1750_s25 = scalar_lea.vmem %s1959_s8, 512  ;;  %p1755_p0 = scmp.lt.s32.totalorder %s1959_s8, %s1959_s8 }
  0x3e   :  { %p1751_p13 = scmp.ne.s32.totalorder %s1959_s8, %s1750_s25  ;;  %p1756_p1 = scmp.lt.s32.totalorder %s1750_s25, %s1750_s25 }
  0x40   :  { %p1757_p2 = por %p1756_p1, %p1755_p0 }
  0x42   :  { %p1758_p3 = pnand %p1757_p2, %p1751_p13 }
  0x44   :  { %1761 = shalt.err (!%p1758_p3)
}
  0x45   :  { %s1866_s5 = smov 128   ;;  %s1867_s24 = smov 8  }
  0x46   :  { %28 = dma.hbm_to_vmem [thread:$0]  %s2232_s0, 512, %s1959_s8, [#allocation4], %s1866_s5, %s1866_s5, %s1867_s24  }
  0x47   :  { %s1868_s29 = smov [#allocation8]   ;;  %s1869_s9 = smov [#allocation11]  }
  0x48   :  { %s45_s30 = sshll.u32 %s1868_s29, 4  ;;  %s67_s10 = sshll.u32 %s1869_s9, 4  ;;  %s46_s30 = int_to_ptr.vmem [resolvable:$true] %s45_s30  ;;  %s68_s10 = int_to_ptr.vmem [resolvable:$true] %s67_s10 }
  0x49   :  { %s1762_s13 = scalar_lea.hbm %s2234_s2, 16 }
  0x4a   :  { %p1763_p4 = scmp.ne.s32.totalorder %s2234_s2, %s1762_s13  ;;  %p1766_p5 = scmp.lt.u32.totalorder %s1762_s13, %s2234_s2 }
  0x4c   :  { %p1768_p6 = pnand %p1766_p5, %p1763_p4 }
  0x4e   :  { %1771 = shalt.err (!%p1768_p6)
}
  0x4f   :  { %s1772_s0 = scalar_lea.vmem %s46_s30, 16  ;;  %s1776_s8 = scalar_lea.vmem %s46_s30, 32 }
  0x50   :  { %p1773_p7 = scmp.ne.s32.totalorder %s46_s30, %s1772_s0  ;;  %p1777_p8 = scmp.lt.s32.totalorder %s46_s30, %s46_s30 }
  0x51   :  { %p1778_p9 = scmp.lt.s32.totalorder %s1776_s8, %s1772_s0 }
  0x53   :  { %p1779_p10 = por %p1778_p9, %p1777_p8 }
  0x55   :  { %p1780_p11 = pnand %p1779_p10, %p1773_p7 }
  0x57   :  { %1783 = shalt.err (!%p1780_p11)
}
  0x58   :  { %48 = dma.hbm_to_vmem [thread:$0]  %s2234_s2, 16, %s46_s30, [#allocation7]  }
  0x59   :  { %s1784_s20 = scalar_lea.hbm %s2236_s4, 16 }
  0x5a   :  { %p1785_p12 = scmp.ne.s32.totalorder %s2236_s4, %s1784_s20  ;;  %p1788_p13 = scmp.lt.u32.totalorder %s1784_s20, %s2236_s4 }
  0x5c   :  { %p1790_p0 = pnand %p1788_p13, %p1785_p12 }
  0x5e   :  { %1793 = shalt.err (!%p1790_p0)
}
  0x5f   :  { %s1794_s26 = scalar_lea.vmem %s68_s10, 16  ;;  %s1798_s28 = scalar_lea.vmem %s68_s10, 32 }
  0x60   :  { %p1795_p1 = scmp.ne.s32.totalorder %s68_s10, %s1794_s26  ;;  %p1799_p2 = scmp.lt.s32.totalorder %s68_s10, %s68_s10 }
  0x61   :  { %p1800_p3 = scmp.lt.s32.totalorder %s1798_s28, %s1794_s26 }
  0x63   :  { %p1801_p4 = por %p1800_p3, %p1799_p2 }
  0x65   :  { %p1802_p5 = pnand %p1801_p4, %p1795_p1 }
  0x67   :  { %1805 = shalt.err (!%p1802_p5)
}
  0x68   :  { %70 = dma.hbm_to_vmem [thread:$0]  %s2236_s4, 16, %s68_s10, [#allocation10]  }
  0x69   :  { %s1870_s30 = smov [#allocation14]   ;;  %s1806_s13 = scalar_lea.hbm %s2238_s6, 16 }
  0x6a   :  { %s89_s9 = sshll.u32 %s1870_s30, 4  ;;  %p1807_p6 = scmp.ne.s32.totalorder %s2238_s6, %s1806_s13  ;;  %s90_s9 = int_to_ptr.vmem [resolvable:$true] %s89_s9 }
  0x6b   :  { %p1810_p7 = scmp.lt.u32.totalorder %s1806_s13, %s2238_s6 }
  0x6d   :  { %p1812_p8 = pnand %p1810_p7, %p1807_p6 }
  0x6f   :  { %1815 = shalt.err (!%p1812_p8)
}
  0x70   :  { %s1816_s0 = scalar_lea.vmem %s90_s9, 16  ;;  %s1820_s4 = scalar_lea.vmem %s90_s9, 32 }
  0x71   :  { %p1817_p9 = scmp.ne.s32.totalorder %s90_s9, %s1816_s0  ;;  %p1821_p10 = scmp.lt.s32.totalorder %s90_s9, %s90_s9 }
  0x72   :  { %p1822_p11 = scmp.lt.s32.totalorder %s1820_s4, %s1816_s0 }
  0x74   :  { %p1823_p12 = por %p1822_p11, %p1821_p10 }
  0x76   :  { %p1824_p13 = pnand %p1823_p12, %p1817_p9 }
  0x78   :  { %1827 = shalt.err (!%p1824_p13)
}
  0x79   :  { %92 = dma.hbm_to_vmem [thread:$0]  %s2238_s6, 16, %s90_s9, [#allocation13]  }
  0x7a   :  { %1850 = dma.done.wait [#allocation4], 512  }
  0x7b   :  { %1851 = vsyncadd [#allocation4], 4294966784 }
  0x7c   :  { %1852 = dma.done.wait [#allocation7], 32  }
  0x7d   :  { %1853 = vsyncadd [#allocation7], 4294967264 }
  0x7e   :  { %1854 = dma.done.wait [#allocation10], 272  }
  0x7f   :  { %1855 = vsyncadd [#allocation10], 4294967024 }
  0x80   :  { %1856 = dma.done.wait [#allocation13], 272  }
  0x81   :  { %1857 = vsyncadd [#allocation13], 4294967024  ;;  %vm119_vm0 = vcmask 261120   ;;  %v115_v0 = vld [vmem:[#allocation3] sm:$0xff]  ;;  %v117_v1 = vld [vmem:[#allocation3 + $0x10] sm:$0xff]  ;;  %v1871_v62 = vmov 0.0  }
  0x82   :  { %v116_v2 = vld [vmem:[#allocation3 + $0x8] sm:$0xff]  ;;  %v120_v3 = vsel %vm119_vm0, %v115_v0, 0.0  ;;  %v126_v4 = vsel %vm119_vm0, %v117_v1, 0.0  ;;  %v118_v5 = vld [vmem:[#allocation3 + $0x18] sm:$0xff]  ;;  %v1392_v44 = vld [vmem:[#allocation6] ss:$0 sm:$0xff]  ;;  %1468 = vmatprep.subr.bf16.mxu1 %v1871_v62 }
  0x83   :  { %121 = vadd.xlane.f32.xlu0 %v120_v3  ;;  %127 = vadd.xlane.f32.xlu1 %v126_v4  ;;  %v123_v6 = vsel %vm119_vm0, %v116_v2, 0.0  ;;  %v129_v7 = vsel %vm119_vm0, %v118_v5, 0.0  ;;  %v1598_v28 = vld [vmem:[#allocation9] sm:$0xff]   ;;  %v1599_v29 = vld [vmem:[#allocation9 + $0x8] sm:$0xff]   ;;  %v1393_v50 = vld [vmem:[#allocation8] ss:$0 sm:$0xff] }
  0x84   :  { %1460 = vmatprep.subr.bf16.mxu0 %v1598_v28  ;;  %vm1872_vm1 = vmmov 0   ;;  %s1873_s6 = smov 96   ;;  %vm280_vm2 = vcmask 64512   ;;  %vm378_vm3 = vcmask 130048   ;;  %s1874_s16 = smov 88   ;;  %vm775_vm4 = vcmask 130112  }
  0x85   :  { %1461 = vmatpush3.bf16.msra.mxu0 %v1598_v28  ;;  %1470 = vmatprep.mubr.msk.bf16.mxu1 %vm1872_vm1, %v1871_v62  ;;  %s1875_s17 = smov 120   ;;  %s1877_s18 = smov 80   ;;  %vm1030_vm5 = vcmask 195712   ;;  %vm1285_vm6 = vcmask 261312  }
  0x86   :  { %1462 = vmatprep.subr.bf16.mxu0 %v1599_v29  ;;  %s1878_s19 = smov 112   ;;  %s1879_s20 = smov 48  }
  0x87   :  { %124 = vadd.xlane.f32.xlu0 %v123_v6  ;;  %130 = vadd.xlane.f32.xlu1 %v129_v7  ;;  %s1880_s21 = smov 72   ;;  %s1881_s22 = smov 104  }
  0x88   :  { %s1882_s23 = smov 40   ;;  %s1883_s25 = smov 16  }
  0x89   :  { %1463 = vmatpush3.bf16.msra.mxu0 %v1599_v29  ;;  %s1884_s26 = smov 24   ;;  %s1885_s28 = smov [#allocation15]  }
  0x8a   :  { %1474 = vmatprep.subr.bf16.mxu0 %v1871_v62  ;;  %s1377_s2 = sshll.u32 %s1885_s28, 4  ;;  %s1378_s2 = int_to_ptr.vmem [resolvable:$true] %s1377_s2 }
  0x8b   :  { %s1828_s29 = scalar_lea.vmem %s1378_s2, 512  ;;  %p1833_p1 = scmp.lt.s32.totalorder %s1378_s2, %s1378_s2 }
  0x8c   :  { %p1829_p0 = scmp.ne.s32.totalorder %s1378_s2, %s1828_s29  ;;  %p1834_p2 = scmp.lt.s32.totalorder %s1828_s29, %s1828_s29 }
  0x8e   :  { %p1835_p3 = por %p1834_p2, %p1833_p1 }
  0x90   :  { %p1836_p4 = pnand %p1835_p3, %p1829_p0 }
 0x110   :  { %v122_v8 = vpop.xlane.xlu0 %121  ;;  %v128_v9 = vpop.xlane.xlu1 %127 }
 0x111   :  { %v133_v10 = vmul.f32 0.03125, %v122_v8  ;;  %v135_v11 = vmul.f32 0.03125, %v128_v9 }
 0x113   :  { %v137_v12 = vsub.f32 %v115_v0, %v133_v10  ;;  %v139_v13 = vsub.f32 %v117_v1, %v135_v11  ;;  %v1394_v0 = vld [vmem:[#allocation11] ss:$0 sm:$0xff] }
 0x114   :  { %v125_v14 = vpop.xlane.xlu0 %124  ;;  %v131_v15 = vpop.xlane.xlu1 %130 }
 0x115   :  { %v134_v16 = vmul.f32 0.03125, %v125_v14  ;;  %v136_v17 = vmul.f32 0.03125, %v131_v15  ;;  %v141_v18 = vmul.f32 %v137_v12, %v137_v12  ;;  %v143_v19 = vmul.f32 %v139_v13, %v139_v13 }
 0x117   :  { %v138_v20 = vsub.f32 %v116_v2, %v134_v16  ;;  %v140_v21 = vsub.f32 %v118_v5, %v136_v17  ;;  %v145_v22 = vsel %vm119_vm0, %v141_v18, 0.0  ;;  %v151_v23 = vsel %vm119_vm0, %v143_v19, 0.0 }
 0x118   :  { %146 = vadd.xlane.f32.xlu0 %v145_v22 }
 0x119   :  { %v142_v24 = vmul.f32 %v138_v20, %v138_v20  ;;  %v144_v25 = vmul.f32 %v140_v21, %v140_v21 }
 0x11b   :  { %v148_v26 = vsel %vm119_vm0, %v142_v24, 0.0  ;;  %v154_v27 = vsel %vm119_vm0, %v144_v25, 0.0 }
 0x11c   :  { %152 = vadd.xlane.f32.xlu0 %v151_v23  ;;  %149 = vadd.xlane.f32.xlu1 %v148_v26 }
 0x120   :  { %155 = vadd.xlane.f32.xlu1 %v154_v27 }
 0x1a5   :  { %v147_v30 = vpop.xlane.xlu0 %146 }
 0x1a6   :  { %v157_v31 = vmul.f32 0.03125, %v147_v30 }
 0x1a8   :  { %v161_v32 = vadd.f32 1e-05, %v157_v31 }
 0x1a9   :  { %v150_v33 = vpop.xlane.xlu1 %149  ;;  %v153_v34 = vpop.xlane.xlu0 %152 }
 0x1aa   :  { %1602 = vrsqrt.f32 %v161_v32  ;;  %v158_v35 = vmul.f32 0.03125, %v150_v33  ;;  %v159_v36 = vmul.f32 0.03125, %v153_v34 }
 0x1ac   :  { %v162_v37 = vadd.f32 1e-05, %v158_v35  ;;  %v163_v38 = vadd.f32 1e-05, %v159_v36 }
 0x1ad   :  { %v156_v39 = vpop.xlane.xlu1 %155 }
 0x1ae   :  { %1604 = vrsqrt.f32 %v162_v37  ;;  %v160_v40 = vmul.f32 0.03125, %v156_v39 }
 0x1af   :  { %1606 = vrsqrt.f32 %v163_v38 }
 0x1b0   :  { %v164_v41 = vadd.f32 1e-05, %v160_v40 }
 0x1b2   :  { %1608 = vrsqrt.f32 %v164_v41 }
 0x1b4   :  { %v1603_v42 = vpop.eup %1602 }
 0x1b5   :  { %v169_v43 = vmul.f32 %v1603_v42, %v137_v12 }
 0x1b7   :  { %v180_v48 = vmul.f32 %v1392_v44, %v169_v43 }
 0x1b8   :  { %v1605_v45 = vpop.eup %1604 }
 0x1b9   :  { %v1607_v46 = vpop.eup %1606  ;;  %v170_v47 = vmul.f32 %v1605_v45, %v138_v20  ;;  %v191_v54 = vadd.f32 %v1393_v50, %v180_v48 }
 0x1ba   :  { %v171_v49 = vmul.f32 %v1607_v46, %v139_v13 }
 0x1bb   :  { %v181_v51 = vmul.f32 %v1392_v44, %v170_v47 }
 0x1bc   :  { %v1609_v52 = vpop.eup %1608  ;;  %v182_v56 = vmul.f32 %v1392_v44, %v171_v49 }
 0x1bd   :  { %v172_v53 = vmul.f32 %v1609_v52, %v140_v21  ;;  %v192_v55 = vadd.f32 %v1393_v50, %v181_v51 }
 0x1be   :  { %v193_v59 = vadd.f32 %v1393_v50, %v182_v56 }
 0x1bf   :  { %v195_v57 = vpack.c.bf16 %v192_v55, %v191_v54  ;;  %v183_v58 = vmul.f32 %v1392_v44, %v172_v53 }
 0x1c1   :  { %1464 = vmatprep.mubr.msk.bf16.mxu0 %vm119_vm0, %v195_v57  ;;  %v194_v60 = vadd.f32 %v1393_v50, %v183_v58 }
 0x1c3   :  { %v196_v61 = vpack.c.bf16 %v194_v60, %v193_v59 }
 0x1c5   :  { %1465 = vmatmul.mubr.msk.bf16.vlgmr.msra.gmra.mrb[0].mxu0 %vm119_vm0, %v196_v61 }
 0x1c6   :  { %1476 = vmatprep.mubr.msk.bf16.mxu0 %vm1872_vm1, %v1871_v62 }
 0x298   :  { %v1466_v63 = vpop.f32.mrb[0].mxu0 }
 0x299   :  { %v260_v1 = vpop.f32.mrb[1].mxu0  ;;  %v269_v3 = vadd.f32 %v1466_v63, %v1394_v0 }
 0x29a   :  { %v1467_v2 = vpop.f32.mrb[2].mxu0  ;;  %v261_v6 = vadd.f32 %v1394_v0, %v260_v1 }
 0x29b   :  { %v272_v4 = vadd.f32 %v1467_v2, %v1394_v0  ;;  %v263_v5 = vpop.f32.mrb[3].mxu0 }
 0x29c   :  { %v264_v7 = vadd.f32 %v1394_v0, %v263_v5 }
 0x29d   :  { %v2047_v8 = vpack.c.bf16 %v272_v4, %v269_v3 }
 0x29e   :  { %v2049_v9 = vpack.c.bf16 %v264_v7, %v261_v6 }
 0x29f   :  { %329 = vrot.lane.b32.xlu1 %v2047_v8, %s1873_s6 }
 0x2a0   :  { %278 = vrot.lane.b32.xlu0 %v2049_v9, %s1873_s6 }
 0x311   :  { %v330_v10 = vpop.permute.xlu1 %329 }
 0x312   :  { %v335_v11 = vsel %vm280_vm2, %v330_v10, 0  ;;  %v279_v12 = vpop.permute.xlu0 %278 }
 0x313   :  { %1475 = vmatpush3.bf16.xpose.msra.mxu0 %v335_v11  ;;  %v285_v13 = vsel %vm280_vm2, %v279_v12, 0 }
 0x314   :  { %1469 = vmatpush3.bf16.xpose.msra.mxu1 %v285_v13  ;;  %1486 = vmatprep.subr.bf16.mxu0 %v1871_v62 }
 0x315   :  { %1480 = vmatprep.subr.bf16.mxu1 %v1871_v62 }
 0x31a   :  { %1477 = vmatmul.mubr.msk.bf16.vlgmr.msra.gmra.mrb[4].mxu0 %vm280_vm2, %v2047_v8 }
 0x31b   :  { %1471 = vmatmul.mubr.msk.bf16.vlgmr.msra.gmra.mrb[0].mxu1 %vm280_vm2, %v2049_v9  ;;  %1488 = vmatprep.mubr.msk.bf16.mxu0 %vm1872_vm1, %v1871_v62 }
 0x31c   :  { %1482 = vmatprep.mubr.msk.bf16.mxu1 %vm1872_vm1, %v1871_v62 }
 0x3ed   :  { %v371_v14 = vpop.f32.mrb[4].mxu0 }
 0x3ee   :  { %v321_v15 = vpop.f32.mrb[0].mxu1  ;;  %v1478_v16 = vpop.f32.mrb[5].mxu0  ;;  %v385_v25 = vsel %vm378_vm3, %v371_v14, -inf }
 0x3ef   :  { %v1472_v17 = vpop.f32.mrb[1].mxu1  ;;  %v374_v18 = vpop.f32.mrb[6].mxu0  ;;  %v379_v19 = vsel %vm378_vm3, %v321_v15, -inf }
 0x3f0   :  { %v1479_v20 = vpop.f32.mrb[7].mxu0  ;;  %380 = vmax.xlane.f32.xlu1 %v379_v19  ;;  %v324_v21 = vpop.f32.mrb[2].mxu1  ;;  %v388_v24 = vsel %vm378_vm3, %v374_v18, -inf }
 0x3f1   :  { %v1473_v22 = vpop.f32.mrb[3].mxu1  ;;  %v382_v23 = vsel %vm378_vm3, %v324_v21, -inf }
 0x3f2   :  { %383 = vmax.xlane.f32.xlu0 %v382_v23 }
 0x3f4   :  { %389 = vmax.xlane.f32.xlu1 %v388_v24 }
 0x3f6   :  { %386 = vmax.xlane.f32.xlu0 %v385_v25 }
 0x405   :  { %472 = vrot.lane.b32.xlu1 %v2047_v8, %s1862_s1 }
 0x409   :  { %525 = vrot.lane.b32.xlu1 %v2049_v9, %s1874_s16 }
 0x47d   :  { %v381_v26 = vpop.xlane.xlu1 %380 }
 0x47e   :  { %v391_v30 = vsub.f32 %v321_v15, %v381_v26 }
 0x47f   :  { %v384_v27 = vpop.xlane.xlu0 %383 }
 0x480   :  { %v392_v28 = vsub.f32 %v324_v21, %v384_v27  ;;  %v395_v37 = vmul.f32 1.442695, %v391_v30 }
 0x481   :  { %v390_v29 = vpop.xlane.xlu1 %389 }
 0x482   :  { %v394_v31 = vsub.f32 %v374_v18, %v390_v29  ;;  %v397_v32 = vmul.f32 1.442695, %v392_v28 }
 0x483   :  { %v387_v33 = vpop.xlane.xlu0 %386 }
 0x484   :  { %v401_v34 = vmul.f32 1.442695, %v394_v31  ;;  %v393_v35 = vsub.f32 %v371_v14, %v387_v33 }
 0x485   :  { %v473_v36 = vpop.permute.xlu1 %472 }
 0x486   :  { %1610 = vpow2.f32 %v401_v34  ;;  %v399_v38 = vmul.f32 1.442695, %v393_v35  ;;  %1487 = vmatpush3.bf16.msra.mxu0 %v473_v36 }
 0x487   :  { %1612 = vpow2.f32 %v397_v32  ;;  %1498 = vmatprep.subr.bf16.mxu0 %v1871_v62 }
 0x488   :  { %1614 = vpow2.f32 %v399_v38 }
 0x489   :  { %1616 = vpow2.f32 %v395_v37  ;;  %v526_v47 = vpop.permute.xlu1 %525 }
 0x48a   :  { %v531_v2 = vsel %vm280_vm2, %v526_v47, 0 }
 0x490   :  { %v1611_v39 = vpop.eup %1610 }
 0x491   :  { %v1613_v40 = vpop.eup %1612  ;;  %v412_v41 = vsel %vm378_vm3, %v1611_v39, 0.0 }
 0x492   :  { %v1615_v42 = vpop.eup %1614  ;;  %413 = vadd.xlane.f32.xlu1 %v412_v41  ;;  %v406_v45 = vsel %vm378_vm3, %v1613_v40, 0.0 }
 0x493   :  { %v409_v43 = vsel %vm378_vm3, %v1615_v42, 0.0  ;;  %v1617_v44 = vpop.eup %1616 }
 0x494   :  { %410 = vadd.xlane.f32.xlu0 %v409_v43  ;;  %v403_v46 = vsel %vm378_vm3, %v1617_v44, 0.0 }
 0x496   :  { %407 = vadd.xlane.f32.xlu1 %v406_v45 }
 0x498   :  { %404 = vadd.xlane.f32.xlu0 %v403_v46 }
 0x4a7   :  { %576 = vrot.lane.b32.xlu1 %v2047_v8, %s1874_s16 }
 0x4ab   :  { %574 = vrot.lane.b32.xlu1 %v2047_v8, %s1875_s17 }
 0x4ae   :  { %425 = vrot.lane.b32.xlu0 %v2049_v9, %s1862_s1  ;;  %s1876_s1 = smov 56  }
 0x4b2   :  { %523 = vrot.lane.b32.xlu0 %v2049_v9, %s1875_s17 }
 0x51f   :  { %v414_v48 = vpop.xlane.xlu1 %413 }
 0x520   :  { %1618 = vrcp.f32 %v414_v48 }
 0x521   :  { %v411_v49 = vpop.xlane.xlu0 %410 }
 0x522   :  { %1620 = vrcp.f32 %v411_v49 }
 0x523   :  { %v408_v50 = vpop.xlane.xlu1 %407 }
 0x524   :  { %1622 = vrcp.f32 %v408_v50 }
 0x525   :  { %v405_v51 = vpop.xlane.xlu0 %404 }
 0x526   :  { %1624 = vrcp.f32 %v405_v51 }
 0x527   :  { %v577_v58 = vpop.permute.xlu1 %576 }
 0x528   :  { %v582_v0 = vsel %vm280_vm2, %v577_v58, 0 }
 0x529   :  { %v426_v52 = vpop.permute.xlu0 %425 }
 0x52a   :  { %v1619_v53 = vpop.eup %1618  ;;  %1481 = vmatpush3.bf16.msra.mxu1 %v426_v52 }
 0x52b   :  { %1492 = vmatprep.subr.bf16.mxu1 %v1871_v62  ;;  %v422_v55 = vmul.f32 %v1619_v53, %v1611_v39  ;;  %v575_v3 = vpop.permute.xlu1 %574 }
 0x52c   :  { %v1621_v54 = vpop.eup %1620 }
 0x52d   :  { %v421_v56 = vmul.f32 %v1621_v54, %v1615_v42  ;;  %v524_v4 = vpop.permute.xlu0 %523 }
 0x52e   :  { %v1623_v57 = vpop.eup %1622 }
 0x52f   :  { %v424_v59 = vpack.c.bf16 %v422_v55, %v421_v56  ;;  %v420_v61 = vmul.f32 %v1623_v57, %v1613_v40 }
 0x530   :  { %v1625_v60 = vpop.eup %1624 }
 0x531   :  { %v419_v63 = vmul.f32 %v1625_v60, %v1617_v44  ;;  %1489 = vmatmul.mubr.msk.bf16.vlgmr.msra.gmra.mrb[8].mxu0 %vm378_vm3, %v424_v59 }
 0x532   :  { %1499 = vmatpush3.bf16.xpose.msra.mxu0 %v582_v0  ;;  %1500 = vmatprep.mubr.msk.bf16.mxu0 %vm1872_vm1, %v1871_v62 }
 0x533   :  { %v423_v1 = vpack.c.bf16 %v420_v61, %v419_v63  ;;  %1510 = vmatprep.subr.bf16.mxu0 %v1871_v62 }
 0x535   :  { %1483 = vmatmul.mubr.msk.bf16.vlgmr.msra.gmra.mrb[4].mxu1 %vm378_vm3, %v423_v1 }
 0x536   :  { %1493 = vmatpush3.bf16.xpose.msra.mxu1 %v531_v2  ;;  %1494 = vmatprep.mubr.msk.bf16.mxu1 %vm1872_vm1, %v1871_v62 }
 0x537   :  { %1504 = vmatprep.subr.bf16.mxu1 %v1871_v62 }
 0x539   :  { %1501 = vmatmul.mubr.msk.bf16.vlgmr.msra.gmra.mrb[12].mxu0 %vm280_vm2, %v575_v3 }
 0x53a   :  { %1512 = vmatprep.mubr.msk.bf16.mxu0 %vm1872_vm1, %v1871_v62 }
 0x53d   :  { %1495 = vmatmul.mubr.msk.bf16.vlgmr.msra.gmra.mrb[8].mxu1 %vm280_vm2, %v524_v4 }
 0x53e   :  { %1506 = vmatprep.mubr.msk.bf16.mxu1 %vm1872_vm1, %v1871_v62 }
 0x604   :  { %v512_v5 = vpop.f32.mrb[8].mxu0 }
 0x605   :  { %v1490_v6 = vpop.f32.mrb[9].mxu0 }
 0x606   :  { %v515_v7 = vpop.f32.mrb[10].mxu0 }
 0x607   :  { %v520_v10 = vpack.c.bf16 %v515_v7, %v512_v5  ;;  %v1491_v11 = vpop.f32.mrb[11].mxu0 }
 0x608   :  { %v465_v12 = vpop.f32.mrb[4].mxu1 }
 0x609   :  { %522 = vst.msk [vmem:[#allocation2 + $0x8] sm:$0xff] %vm280_vm2, %v520_v10  ;;  %v1484_v13 = vpop.f32.mrb[5].mxu1 }
 0x60a   :  { %v468_v14 = vpop.f32.mrb[6].mxu1 }
 0x60b   :  { %v519_v15 = vpack.c.bf16 %v468_v14, %v465_v12  ;;  %v1485_v16 = vpop.f32.mrb[7].mxu1 }
 0x60c   :  { %v618_v17 = vpop.f32.mrb[12].mxu0 }
 0x60d   :  { %521 = vst.msk [vmem:[#allocation2] sm:$0xff] %vm280_vm2, %v519_v15  ;;  %v1502_v18 = vpop.f32.mrb[13].mxu0  ;;  %v631_v27 = vsel %vm378_vm3, %v618_v17, -inf }
 0x60e   :  { %v621_v19 = vpop.f32.mrb[14].mxu0 }
 0x60f   :  { %v1503_v20 = vpop.f32.mrb[15].mxu0  ;;  %v634_v28 = vsel %vm378_vm3, %v621_v19, -inf }
 0x610   :  { %v567_v21 = vpop.f32.mrb[8].mxu1 }
 0x611   :  { %v1496_v22 = vpop.f32.mrb[9].mxu1  ;;  %v625_v23 = vsel %vm378_vm3, %v567_v21, -inf }
 0x612   :  { %626 = vmax.xlane.f32.xlu0 %v625_v23  ;;  %v570_v24 = vpop.f32.mrb[10].mxu1 }
 0x613   :  { %v1497_v25 = vpop.f32.mrb[11].mxu1  ;;  %v628_v26 = vsel %vm378_vm3, %v570_v24, -inf }
 0x614   :  { %629 = vmax.xlane.f32.xlu1 %v628_v26 }
 0x616   :  { %632 = vmax.xlane.f32.xlu0 %v631_v27 }
 0x61a   :  { %635 = vmax.xlane.f32.xlu0 %v634_v28 }
 0x625   :  { %718 = vrot.lane.b32.xlu1 %v2047_v8, %s1876_s1 }
 0x629   :  { %780 = vrot.lane.b32.xlu1 %v2049_v9, %s1877_s18 }
 0x69f   :  { %v627_v29 = vpop.xlane.xlu0 %626 }
 0x6a0   :  { %v637_v31 = vsub.f32 %v567_v21, %v627_v29 }
 0x6a1   :  { %v630_v30 = vpop.xlane.xlu1 %629 }
 0x6a2   :  { %v641_v35 = vmul.f32 1.442695, %v637_v31  ;;  %v638_v36 = vsub.f32 %v570_v24, %v630_v30 }
 0x6a3   :  { %v633_v32 = vpop.xlane.xlu0 %632 }
 0x6a4   :  { %v639_v33 = vsub.f32 %v618_v17, %v633_v32  ;;  %v643_v40 = vmul.f32 1.442695, %v638_v36 }
 0x6a5   :  { %v719_v34 = vpop.permute.xlu1 %718 }
 0x6a6   :  { %v645_v37 = vmul.f32 1.442695, %v639_v33  ;;  %1511 = vmatpush3.bf16.msra.mxu0 %v719_v34 }
 0x6a7   :  { %v636_v38 = vpop.xlane.xlu0 %635  ;;  %1522 = vmatprep.subr.bf16.mxu0 %v1871_v62 }
 0x6a8   :  { %1626 = vpow2.f32 %v645_v37  ;;  %v640_v39 = vsub.f32 %v621_v19, %v636_v38 }
 0x6a9   :  { %1628 = vpow2.f32 %v641_v35  ;;  %v781_v50 = vpop.permute.xlu1 %780 }
 0x6aa   :  { %v647_v41 = vmul.f32 1.442695, %v640_v39  ;;  %v786_v5 = vsel %vm280_vm2, %v781_v50, 0 }
 0x6ac   :  { %1630 = vpow2.f32 %v647_v41 }
 0x6ad   :  { %1632 = vpow2.f32 %v643_v40 }
 0x6b2   :  { %v1627_v42 = vpop.eup %1626 }
 0x6b3   :  { %v655_v43 = vsel %vm378_vm3, %v1627_v42, 0.0  ;;  %v1629_v44 = vpop.eup %1628 }
 0x6b4   :  { %656 = vadd.xlane.f32.xlu0 %v655_v43  ;;  %v649_v46 = vsel %vm378_vm3, %v1629_v44, 0.0 }
 0x6b6   :  { %v1631_v45 = vpop.eup %1630 }
 0x6b7   :  { %v658_v47 = vsel %vm378_vm3, %v1631_v45, 0.0  ;;  %v1633_v48 = vpop.eup %1632 }
 0x6b8   :  { %650 = vadd.xlane.f32.xlu0 %v649_v46  ;;  %659 = vadd.xlane.f32.xlu1 %v658_v47  ;;  %v652_v49 = vsel %vm378_vm3, %v1633_v48, 0.0 }
 0x6bc   :  { %653 = vadd.xlane.f32.xlu1 %v652_v49 }
 0x6cd   :  { %831 = vrot.lane.b32.xlu1 %v2047_v8, %s1877_s18 }
 0x6ce   :  { %671 = vrot.lane.b32.xlu0 %v2049_v9, %s1876_s1 }
 0x6d1   :  { %829 = vrot.lane.b32.xlu1 %v2047_v8, %s1878_s19 }
 0x6d2   :  { %778 = vrot.lane.b32.xlu0 %v2049_v9, %s1878_s19 }
 0x741   :  { %v657_v51 = vpop.xlane.xlu0 %656 }
 0x742   :  { %1634 = vrcp.f32 %v657_v51 }
 0x745   :  { %v651_v52 = vpop.xlane.xlu0 %650  ;;  %v660_v53 = vpop.xlane.xlu1 %659 }
 0x746   :  { %1636 = vrcp.f32 %v660_v53 }
 0x747   :  { %1638 = vrcp.f32 %v651_v52 }
 0x749   :  { %v672_v54 = vpop.permute.xlu0 %671  ;;  %v654_v55 = vpop.xlane.xlu1 %653 }
 0x74a   :  { %1640 = vrcp.f32 %v654_v55  ;;  %1505 = vmatpush3.bf16.msra.mxu1 %v672_v54 }
 0x74b   :  { %1516 = vmatprep.subr.bf16.mxu1 %v1871_v62 }
 0x74c   :  { %v1635_v56 = vpop.eup %1634 }
 0x74d   :  { %v667_v59 = vmul.f32 %v1635_v56, %v1627_v42  ;;  %v832_v61 = vpop.permute.xlu1 %831  ;;  %v779_v7 = vpop.permute.xlu0 %778 }
 0x74e   :  { %v837_v3 = vsel %vm280_vm2, %v832_v61, 0 }
 0x750   :  { %v1637_v57 = vpop.eup %1636 }
 0x751   :  { %v1639_v58 = vpop.eup %1638  ;;  %v668_v60 = vmul.f32 %v1637_v57, %v1631_v45  ;;  %v830_v6 = vpop.permute.xlu1 %829 }
 0x752   :  { %v665_v1 = vmul.f32 %v1639_v58, %v1629_v44 }
 0x753   :  { %v670_v0 = vpack.c.bf16 %v668_v60, %v667_v59 }
 0x754   :  { %v1641_v63 = vpop.eup %1640 }
 0x755   :  { %v666_v2 = vmul.f32 %v1641_v63, %v1633_v48  ;;  %1513 = vmatmul.mubr.msk.bf16.vlgmr.msra.gmra.mrb[16].mxu0 %vm378_vm3, %v670_v0 }
 0x756   :  { %1523 = vmatpush3.bf16.xpose.msra.mxu0 %v837_v3  ;;  %1524 = vmatprep.mubr.msk.bf16.mxu0 %vm1872_vm1, %v1871_v62 }
 0x757   :  { %v669_v4 = vpack.c.bf16 %v666_v2, %v665_v1  ;;  %1534 = vmatprep.subr.bf16.mxu0 %v1871_v62 }
 0x759   :  { %1507 = vmatmul.mubr.msk.bf16.vlgmr.msra.gmra.mrb[12].mxu1 %vm378_vm3, %v669_v4 }
 0x75a   :  { %1517 = vmatpush3.bf16.xpose.msra.mxu1 %v786_v5  ;;  %1518 = vmatprep.mubr.msk.bf16.mxu1 %vm1872_vm1, %v1871_v62 }
 0x75b   :  { %1528 = vmatprep.subr.bf16.mxu1 %v1871_v62 }
 0x75d   :  { %1525 = vmatmul.mubr.msk.bf16.vlgmr.msra.gmra.mrb[20].mxu0 %vm280_vm2, %v830_v6 }
 0x75e   :  { %1536 = vmatprep.mubr.msk.bf16.mxu0 %vm1872_vm1, %v1871_v62 }
 0x761   :  { %1519 = vmatmul.mubr.msk.bf16.vlgmr.msra.gmra.mrb[16].mxu1 %vm280_vm2, %v779_v7 }
 0x762   :  { %1530 = vmatprep.mubr.msk.bf16.mxu1 %vm1872_vm1, %v1871_v62 }
 0x828   :  { %v2139_v10 = vpop.f32.mrb[16].mxu0 }
 0x829   :  { %v1514_v11 = vpop.f32.mrb[17].mxu0 }
 0x82a   :  { %v2141_v12 = vpop.f32.mrb[18].mxu0 }
 0x82b   :  { %v766_v13 = vpack.c.bf16 %v2141_v12, %v2139_v10  ;;  %v1515_v14 = vpop.f32.mrb[19].mxu0 }
 0x82c   :  { %v2145_v15 = vpop.f32.mrb[12].mxu1 }
 0x82d   :  { %v1508_v16 = vpop.f32.mrb[13].mxu1 }
 0x82e   :  { %v2147_v17 = vpop.f32.mrb[14].mxu1 }
 0x82f   :  { %v765_v18 = vpack.c.bf16 %v2147_v17, %v2145_v15  ;;  %v1509_v19 = vpop.f32.mrb[15].mxu1 }
 0x830   :  { %v873_v20 = vpop.f32.mrb[20].mxu0 }
 0x831   :  { %v1526_v21 = vpop.f32.mrb[21].mxu0  ;;  %v886_v30 = vsel %vm378_vm3, %v873_v20, -inf }
 0x832   :  { %v876_v22 = vpop.f32.mrb[22].mxu0 }
 0x833   :  { %v1527_v23 = vpop.f32.mrb[23].mxu0  ;;  %v889_v31 = vsel %vm378_vm3, %v876_v22, -inf }
 0x834   :  { %v822_v24 = vpop.f32.mrb[16].mxu1 }
 0x835   :  { %v1520_v25 = vpop.f32.mrb[17].mxu1  ;;  %v880_v26 = vsel %vm378_vm3, %v822_v24, -inf }
 0x836   :  { %881 = vmax.xlane.f32.xlu0 %v880_v26  ;;  %v825_v27 = vpop.f32.mrb[18].mxu1 }
 0x837   :  { %v1521_v28 = vpop.f32.mrb[19].mxu1  ;;  %v883_v29 = vsel %vm378_vm3, %v825_v27, -inf }
 0x838   :  { %884 = vmax.xlane.f32.xlu1 %v883_v29 }
 0x83a   :  { %887 = vmax.xlane.f32.xlu0 %v886_v30 }
 0x83e   :  { %890 = vmax.xlane.f32.xlu0 %v889_v31 }
 0x849   :  { %973 = vrot.lane.b32.xlu1 %v2047_v8, %s1879_s20 }
 0x84d   :  { %1035 = vrot.lane.b32.xlu1 %v2049_v9, %s1880_s21 }
 0x8c3   :  { %v882_v32 = vpop.xlane.xlu0 %881 }
 0x8c4   :  { %v892_v34 = vsub.f32 %v822_v24, %v882_v32 }
 0x8c5   :  { %v885_v33 = vpop.xlane.xlu1 %884 }
 0x8c6   :  { %v896_v38 = vmul.f32 1.442695, %v892_v34  ;;  %v893_v39 = vsub.f32 %v825_v27, %v885_v33 }
 0x8c7   :  { %v888_v35 = vpop.xlane.xlu0 %887 }
 0x8c8   :  { %v894_v36 = vsub.f32 %v873_v20, %v888_v35  ;;  %v898_v43 = vmul.f32 1.442695, %v893_v39 }
 0x8c9   :  { %v974_v37 = vpop.permute.xlu1 %973 }
 0x8ca   :  { %v900_v40 = vmul.f32 1.442695, %v894_v36  ;;  %1535 = vmatpush3.bf16.msra.mxu0 %v974_v37 }
 0x8cb   :  { %v891_v41 = vpop.xlane.xlu0 %890  ;;  %1546 = vmatprep.subr.bf16.mxu0 %v1871_v62 }
 0x8cc   :  { %1642 = vpow2.f32 %v900_v40  ;;  %v895_v42 = vsub.f32 %v876_v22, %v891_v41 }
 0x8cd   :  { %1644 = vpow2.f32 %v896_v38  ;;  %v1036_v53 = vpop.permute.xlu1 %1035 }
 0x8ce   :  { %v902_v44 = vmul.f32 1.442695, %v895_v42  ;;  %v1041_v11 = vsel %vm280_vm2, %v1036_v53, 0 }
 0x8d0   :  { %1646 = vpow2.f32 %v902_v44 }
 0x8d1   :  { %1648 = vpow2.f32 %v898_v43 }
 0x8d6   :  { %v1643_v45 = vpop.eup %1642 }
 0x8d7   :  { %v910_v46 = vsel %vm378_vm3, %v1643_v45, 0.0  ;;  %v1645_v47 = vpop.eup %1644 }
 0x8d8   :  { %911 = vadd.xlane.f32.xlu0 %v910_v46  ;;  %v904_v49 = vsel %vm378_vm3, %v1645_v47, 0.0 }
 0x8da   :  { %v1647_v48 = vpop.eup %1646 }
 0x8db   :  { %v913_v50 = vsel %vm378_vm3, %v1647_v48, 0.0  ;;  %v1649_v51 = vpop.eup %1648 }
 0x8dc   :  { %905 = vadd.xlane.f32.xlu0 %v904_v49  ;;  %914 = vadd.xlane.f32.xlu1 %v913_v50  ;;  %v907_v52 = vsel %vm378_vm3, %v1649_v51, 0.0 }
 0x8e0   :  { %908 = vadd.xlane.f32.xlu1 %v907_v52 }
 0x8f1   :  { %1086 = vrot.lane.b32.xlu1 %v2047_v8, %s1880_s21 }
 0x8f2   :  { %926 = vrot.lane.b32.xlu0 %v2049_v9, %s1879_s20 }
 0x8f5   :  { %1084 = vrot.lane.b32.xlu1 %v2047_v8, %s1881_s22 }
 0x8f6   :  { %1033 = vrot.lane.b32.xlu0 %v2049_v9, %s1881_s22 }
 0x965   :  { %v912_v54 = vpop.xlane.xlu0 %911 }
 0x966   :  { %1650 = vrcp.f32 %v912_v54 }
 0x969   :  { %v906_v55 = vpop.xlane.xlu0 %905  ;;  %v915_v56 = vpop.xlane.xlu1 %914 }
 0x96a   :  { %1652 = vrcp.f32 %v915_v56 }
 0x96b   :  { %1654 = vrcp.f32 %v906_v55 }
 0x96d   :  { %v927_v57 = vpop.permute.xlu0 %926  ;;  %v909_v58 = vpop.xlane.xlu1 %908 }
 0x96e   :  { %1656 = vrcp.f32 %v909_v58  ;;  %1529 = vmatpush3.bf16.msra.mxu1 %v927_v57 }
 0x96f   :  { %1540 = vmatprep.subr.bf16.mxu1 %v1871_v62 }
 0x970   :  { %v1651_v59 = vpop.eup %1650 }
 0x971   :  { %v922_v63 = vmul.f32 %v1651_v59, %v1643_v45  ;;  %v1087_v1 = vpop.permute.xlu1 %1086  ;;  %v1034_v16 = vpop.permute.xlu0 %1033 }
 0x972   :  { %v1092_v6 = vsel %vm280_vm2, %v1087_v1, 0 }
 0x974   :  { %v1653_v60 = vpop.eup %1652 }
 0x975   :  { %v1655_v61 = vpop.eup %1654  ;;  %v923_v0 = vmul.f32 %v1653_v60, %v1647_v48  ;;  %v1085_v14 = vpop.permute.xlu1 %1084 }
 0x976   :  { %v920_v4 = vmul.f32 %v1655_v61, %v1645_v47 }
 0x977   :  { %v925_v3 = vpack.c.bf16 %v923_v0, %v922_v63 }
 0x978   :  { %v1657_v2 = vpop.eup %1656 }
 0x979   :  { %v921_v5 = vmul.f32 %v1657_v2, %v1649_v51  ;;  %1537 = vmatmul.mubr.msk.bf16.vlgmr.msra.gmra.mrb[24].mxu0 %vm378_vm3, %v925_v3 }
 0x97a   :  { %1547 = vmatpush3.bf16.xpose.msra.mxu0 %v1092_v6  ;;  %1548 = vmatprep.mubr.msk.bf16.mxu0 %vm1872_vm1, %v1871_v62 }
 0x97b   :  { %v924_v7 = vpack.c.bf16 %v921_v5, %v920_v4  ;;  %1558 = vmatprep.subr.bf16.mxu0 %v1871_v62 }
 0x97d   :  { %1531 = vmatmul.mubr.msk.bf16.vlgmr.msra.gmra.mrb[20].mxu1 %vm378_vm3, %v924_v7 }
 0x97e   :  { %1541 = vmatpush3.bf16.xpose.msra.mxu1 %v1041_v11  ;;  %1542 = vmatprep.mubr.msk.bf16.mxu1 %vm1872_vm1, %v1871_v62 }
 0x97f   :  { %1552 = vmatprep.subr.bf16.mxu1 %v1871_v62 }
 0x981   :  { %1549 = vmatmul.mubr.msk.bf16.vlgmr.msra.gmra.mrb[28].mxu0 %vm280_vm2, %v1085_v14  ;;  %v1600_v14 = vld [vmem:[#allocation12] sm:$0xff]  }
 0x982   :  { %1560 = vmatprep.mubr.msk.bf16.mxu0 %vm1872_vm1, %v1871_v62 }
 0x985   :  { %1543 = vmatmul.mubr.msk.bf16.vlgmr.msra.gmra.mrb[24].mxu1 %vm280_vm2, %v1034_v16  ;;  %v1601_v16 = vld [vmem:[#allocation12 + $0x8] sm:$0xff]  }
 0x986   :  { %1554 = vmatprep.mubr.msk.bf16.mxu1 %vm1872_vm1, %v1871_v62 }
 0xa4c   :  { %v1013_v19 = vpop.f32.mrb[24].mxu0 }
 0xa4d   :  { %v1538_v20 = vpop.f32.mrb[25].mxu0 }
 0xa4e   :  { %v1016_v21 = vpop.f32.mrb[26].mxu0 }
 0xa4f   :  { %v1021_v22 = vpack.c.bf16 %v1016_v21, %v1013_v19  ;;  %v1539_v23 = vpop.f32.mrb[27].mxu0 }
 0xa50   :  { %v966_v24 = vpop.f32.mrb[20].mxu1 }
 0xa51   :  { %v1532_v25 = vpop.f32.mrb[21].mxu1 }
 0xa52   :  { %v969_v26 = vpop.f32.mrb[22].mxu1 }
 0xa53   :  { %v1020_v27 = vpack.c.bf16 %v969_v26, %v966_v24  ;;  %v1533_v28 = vpop.f32.mrb[23].mxu1 }
 0xa54   :  { %v1128_v29 = vpop.f32.mrb[28].mxu0 }
 0xa55   :  { %v1550_v30 = vpop.f32.mrb[29].mxu0  ;;  %v1141_v38 = vsel %vm378_vm3, %v1128_v29, -inf }
 0xa56   :  { %v1131_v31 = vpop.f32.mrb[30].mxu0 }
 0xa57   :  { %v1551_v32 = vpop.f32.mrb[31].mxu0  ;;  %v1144_v39 = vsel %vm378_vm3, %v1131_v31, -inf }
 0xa58   :  { %v1077_v33 = vpop.f32.mrb[24].mxu1 }
 0xa59   :  { %v1544_v34 = vpop.f32.mrb[25].mxu1  ;;  %v1135_v35 = vsel %vm378_vm3, %v1077_v33, -inf }
 0xa5a   :  { %1136 = vmax.xlane.f32.xlu0 %v1135_v35  ;;  %v1080_v62 = vpop.f32.mrb[26].mxu1 }
 0xa5b   :  { %v1545_v36 = vpop.f32.mrb[27].mxu1  ;;  %v1138_v37 = vsel %vm378_vm3, %v1080_v62, -inf }
 0xa5c   :  { %1139 = vmax.xlane.f32.xlu1 %v1138_v37 }
 0xa5e   :  { %1142 = vmax.xlane.f32.xlu0 %v1141_v38 }
 0xa62   :  { %1145 = vmax.xlane.f32.xlu0 %v1144_v39 }
 0xae7   :  { %v1137_v40 = vpop.xlane.xlu0 %1136 }
 0xae8   :  { %v1147_v41 = vsub.f32 %v1077_v33, %v1137_v40  ;;  %v1415_v33 = vld [vmem:[#allocation14] ss:$0 sm:$0xff] }
 0xae9   :  { %v1140_v42 = vpop.xlane.xlu1 %1139 }
 0xaea   :  { %v1151_v45 = vmul.f32 1.442695, %v1147_v41  ;;  %v1148_v46 = vsub.f32 %v1080_v62, %v1140_v42 }
 0xaeb   :  { %v1143_v43 = vpop.xlane.xlu0 %1142 }
 0xaec   :  { %v1149_v44 = vsub.f32 %v1128_v29, %v1143_v43  ;;  %v1153_v50 = vmul.f32 1.442695, %v1148_v46 }
 0xaee   :  { %v1155_v47 = vmul.f32 1.442695, %v1149_v44 }
 0xaef   :  { %v1146_v48 = vpop.xlane.xlu0 %1145 }
 0xaf0   :  { %1658 = vpow2.f32 %v1155_v47  ;;  %v1150_v49 = vsub.f32 %v1131_v31, %v1146_v48 }
 0xaf1   :  { %1660 = vpow2.f32 %v1151_v45 }
 0xaf2   :  { %v1157_v51 = vmul.f32 1.442695, %v1150_v49 }
 0xaf4   :  { %1662 = vpow2.f32 %v1157_v51 }
 0xaf5   :  { %1664 = vpow2.f32 %v1153_v50 }
 0xafa   :  { %v1659_v52 = vpop.eup %1658 }
 0xafb   :  { %v1165_v53 = vsel %vm378_vm3, %v1659_v52, 0.0  ;;  %v1661_v54 = vpop.eup %1660 }
 0xafc   :  { %1166 = vadd.xlane.f32.xlu0 %v1165_v53  ;;  %v1159_v56 = vsel %vm378_vm3, %v1661_v54, 0.0 }
 0xafe   :  { %v1663_v55 = vpop.eup %1662 }
 0xaff   :  { %v1168_v57 = vsel %vm378_vm3, %v1663_v55, 0.0  ;;  %v1665_v58 = vpop.eup %1664 }
 0xb00   :  { %1160 = vadd.xlane.f32.xlu0 %v1159_v56  ;;  %1169 = vadd.xlane.f32.xlu1 %v1168_v57  ;;  %v1162_v59 = vsel %vm378_vm3, %v1665_v58, 0.0 }
 0xb04   :  { %1163 = vadd.xlane.f32.xlu1 %v1162_v59 }
 0xb15   :  { %1228 = vrot.lane.b32.xlu1 %v2047_v8, %s1882_s23 }
 0xb16   :  { %1181 = vrot.lane.b32.xlu0 %v2049_v9, %s1882_s23 }
 0xb19   :  { %769 = vrot.lane.b32.xlu1 %v765_v18, %s1867_s24 }
 0xb1a   :  { %1024 = vrot.lane.b32.xlu0 %v1020_v27, %s1883_s25 }
 0xb1d   :  { %771 = vrot.lane.b32.xlu1 %v766_v13, %s1867_s24 }
 0xb21   :  { %1026 = vrot.lane.b32.xlu1 %v1021_v22, %s1883_s25 }
 0xb89   :  { %v1167_v60 = vpop.xlane.xlu0 %1166 }
 0xb8a   :  { %1666 = vrcp.f32 %v1167_v60 }
 0xb8d   :  { %v1161_v61 = vpop.xlane.xlu0 %1160  ;;  %v1170_v63 = vpop.xlane.xlu1 %1169 }
 0xb8e   :  { %1668 = vrcp.f32 %v1170_v63 }
 0xb8f   :  { %1670 = vrcp.f32 %v1161_v61 }
 0xb91   :  { %v1182_v8 = vpop.permute.xlu0 %1181  ;;  %v1164_v9 = vpop.xlane.xlu1 %1163 }
 0xb92   :  { %1672 = vrcp.f32 %v1164_v9  ;;  %1553 = vmatpush3.bf16.msra.mxu1 %v1182_v8 }
 0xb93   :  { %1564 = vmatprep.subr.bf16.mxu1 %v1600_v14 }
 0xb94   :  { %v1667_v17 = vpop.eup %1666 }
 0xb95   :  { %v1229_v15 = vpop.permute.xlu1 %1228  ;;  %v1177_v12 = vmul.f32 %v1667_v17, %v1659_v52  ;;  %v1025_v1 = vpop.permute.xlu0 %1024 }
 0xb96   :  { %1559 = vmatpush3.bf16.msra.mxu0 %v1229_v15 }
 0xb98   :  { %v1669_v18 = vpop.eup %1668 }
 0xb99   :  { %v770_v0 = vpop.permute.xlu1 %769  ;;  %v1671_v10 = vpop.eup %1670  ;;  %v1178_v13 = vmul.f32 %v1669_v18, %v1663_v55 }
 0xb9a   :  { %776 = vst.msk [vmem:[#allocation2] sm:$0xff] %vm775_vm4, %v770_v0  ;;  %v1175_v4 = vmul.f32 %v1671_v10, %v1661_v54 }
 0xb9b   :  { %1031 = vst.msk [vmem:[#allocation2] sm:$0xff] %vm1030_vm5, %v1025_v1  ;;  %v1180_v3 = vpack.c.bf16 %v1178_v13, %v1177_v12 }
 0xb9c   :  { %v1673_v2 = vpop.eup %1672 }
 0xb9d   :  { %v1176_v5 = vmul.f32 %v1673_v2, %v1665_v58  ;;  %v772_v6 = vpop.permute.xlu1 %771  ;;  %1561 = vmatmul.mubr.msk.bf16.vlgmr.msra.gmra.mrb[32].mxu0 %vm378_vm3, %v1180_v3 }
 0xb9e   :  { %777 = vst.msk [vmem:[#allocation2 + $0x8] sm:$0xff] %vm775_vm4, %v772_v6 }
 0xb9f   :  { %v1179_v7 = vpack.c.bf16 %v1176_v5, %v1175_v4 }
 0xba1   :  { %1555 = vmatmul.mubr.msk.bf16.vlgmr.msra.gmra.mrb[28].mxu1 %vm378_vm3, %v1179_v7  ;;  %v1027_v11 = vpop.permute.xlu1 %1026 }
 0xba2   :  { %1032 = vst.msk [vmem:[#allocation2 + $0x8] sm:$0xff] %vm1030_vm5, %v1027_v11  ;;  %1565 = vmatpush3.bf16.msra.mxu1 %v1600_v14 }
 0xba3   :  { %1566 = vmatprep.subr.bf16.mxu1 %v1601_v16 }
 0xba6   :  { %1567 = vmatpush3.bf16.msra.mxu1 %v1601_v16 }
 0xc70   :  { %v1268_v19 = vpop.f32.mrb[32].mxu0 }
 0xc71   :  { %v1562_v20 = vpop.f32.mrb[33].mxu0 }
 0xc72   :  { %v1271_v21 = vpop.f32.mrb[34].mxu0 }
 0xc73   :  { %v1276_v22 = vpack.c.bf16 %v1271_v21, %v1268_v19  ;;  %v1563_v23 = vpop.f32.mrb[35].mxu0 }
 0xc74   :  { %v1221_v24 = vpop.f32.mrb[28].mxu1 }
 0xc75   :  { %v1556_v25 = vpop.f32.mrb[29].mxu1  ;;  %1281 = vrot.lane.b32.xlu1 %v1276_v22, %s1884_s26 }
 0xc76   :  { %v1224_v26 = vpop.f32.mrb[30].mxu1 }
 0xc77   :  { %v1275_v27 = vpack.c.bf16 %v1224_v26, %v1221_v24  ;;  %v1557_v28 = vpop.f32.mrb[31].mxu1 }
 0xc79   :  { %1279 = vrot.lane.b32.xlu0 %v1275_v27, %s1884_s26 }
 0xce7   :  { %v1282_v29 = vpop.permute.xlu1 %1281 }
 0xce8   :  { %1287 = vst.msk [vmem:[#allocation2 + $0x8] sm:$0xff] %vm1285_vm6, %v1282_v29 }
 0xceb   :  { %v1280_v30 = vpop.permute.xlu0 %1279 }
 0xcec   :  { %1286 = vst.msk [vmem:[#allocation2] sm:$0xff] %vm1285_vm6, %v1280_v30 }
 0xcef   :  { %v1289_v32 = vld [vmem:[#allocation2 + $0x8] sm:$0xff] }
 0xcf3   :  { %v1288_v31 = vld [vmem:[#allocation2] sm:$0xff] }
 0xcf4   :  { %1568 = vmatprep.mubr.msk.bf16.mxu1 %vm119_vm0, %v1288_v31 }
 0xcf5   :  { %1569 = vmatmul.mubr.msk.bf16.vlgmr.msra.gmra.mrb[32].mxu1 %vm119_vm0, %v1289_v32 }
 0xdc8   :  { %v1570_v34 = vpop.f32.mrb[32].mxu1 }
 0xdc9   :  { %v1362_v35 = vadd.f32 %v1570_v34, %v1415_v33  ;;  %v1353_v62 = vpop.f32.mrb[33].mxu1 }
 0xdca   :  { %v1354_v36 = vadd.f32 %v1415_v33, %v1353_v62  ;;  %v1571_v37 = vpop.f32.mrb[34].mxu1 }
 0xdcb   :  { %1370 = vst.msk [vmem:[#allocation15 + $0x10] sm:$0xff] %vm119_vm0, %v1362_v35  ;;  %v1365_v38 = vadd.f32 %v1571_v37, %v1415_v33  ;;  %v1356_v39 = vpop.f32.mrb[35].mxu1 }
 0xdcc   :  { %1368 = vst.msk [vmem:[#allocation15] sm:$0xff] %vm119_vm0, %v1354_v36  ;;  %v1357_v40 = vadd.f32 %v1415_v33, %v1356_v39 }
 0xdcd   :  { %1371 = vst.msk [vmem:[#allocation15 + $0x18] sm:$0xff] %vm119_vm0, %v1365_v38 }
 0xdce   :  { %1369 = vst.msk [vmem:[#allocation15 + $0x8] sm:$0xff] %vm119_vm0, %v1357_v40 }
 0xdcf   :  { %1839 = shalt.err (!%p1836_p4)
}
 0xdd0   :  { %s1840_s11 = scalar_lea.hbm %s2239_s7, 512 }
 0xdd1   :  { %p1841_p5 = scmp.ne.s32.totalorder %s2239_s7, %s1840_s11  ;;  %p1844_p6 = scmp.lt.u32.totalorder %s1840_s11, %s2239_s7 }
 0xdd3   :  { %p1846_p7 = pnand %p1844_p6, %p1841_p5 }
 0xdd5   :  { %1849 = shalt.err (!%p1846_p7)
}
 0xdd6   :  { %1383 = dma.vmem_to_hbm [thread:$0]  %s1378_s2, 512, %s2239_s7, [#allocation5], %s1866_s5, %s1866_s5, %s1867_s24  }
 0xdd7   :  { %1858 = dma.done.wait [#allocation5], 512  }
 0xdd8   :  { %1859 = vsyncadd [#allocation5], 4294966784 }
 0xdd9   :  { %1387 = vsyncpa [#allocation4], 1 }
 0xdda   :  { %1388 = vsyncpa [#allocation7], 1 }
 0xddb   :  { %1389 = vsyncpa [#allocation10], 1 }
 0xddc   :  { %1390 = vsyncpa [#allocation13], 1 }
 0xddd   :  { %1391 = vsyncpa [#allocation5], 1 }

</bundles_post_ra>
